<compile_context>
chip_gen: v6e
topology: v6e:2x2x1
jax: 0.10.0
libtpu: 0.0.40
codegen_flags: <defaults>
</compile_context>

<pallas_src>
import functools

import jax
import jax.numpy as jnp
from jax.experimental import pallas as pl
from jax.experimental.pallas import tpu as pltpu

# Layer sizes from the PyTorch module: Linear(8,256) ... Linear(64,2)
LAYER_DIMS = [8, 256, 512, 512, 512, 256, 256, 128, 64, 2]
W_BLOB_COLS = 512      # every layer's weight slot padded to 512 output columns
OUT_PAD = 128          # fc9 output padded to 128 lanes (lane-dense store)
ROW_ALIGN = 16         # bf16 sublane packing: align every layer's row slot


def _round_up(x, m):
    return (x + m - 1) // m * m


# Static per-layer slot table: (row_offset_in_blob, in_dim, compute_out_dim)
_LAYER_SLOTS = []
_off = 0
for _k, (_din, _dout) in enumerate(zip(LAYER_DIMS[:-1], LAYER_DIMS[1:])):
    _cout = _dout if _k < len(LAYER_DIMS) - 2 else OUT_PAD   # pad fc9 out 2->128
    _LAYER_SLOTS.append((_off, _din, _cout))
    _off += _round_up(_din, ROW_ALIGN)
W_BLOB_ROWS = _off            # 2512
B_BLOB_ROWS = _round_up(len(_LAYER_SLOTS), 16)   # 16
N_LAYERS = len(_LAYER_SLOTS)


def mlp_kernel(x_ref, w_ref, b_ref, o_ref):
    """x_ref: [tm, 8] f32, w_ref: [2512, 512] bf16, b_ref: [16, 512] f32,
    o_ref: [tm, 128] f32 (only first 2 columns meaningful)."""
    h = x_ref[...]  # f32 activations; cast to bf16 right before each MXU dot
    for k, (off, in_d, out_d) in enumerate(_LAYER_SLOTS):
        w = w_ref[pl.ds(off, in_d), pl.ds(0, out_d)]      # bf16 [in_d, out_d]
        b = b_ref[pl.ds(k, 1), pl.ds(0, out_d)]           # f32  [1, out_d]
        h = jnp.dot(h.astype(jnp.bfloat16), w,
                    preferred_element_type=jnp.float32) + b
        if 0 < k < N_LAYERS - 1:                          # ReLU on fc2..fc8 only
            h = jnp.maximum(h, 0.0)
    o_ref[...] = h.astype(o_ref.dtype)                    # [tm, 128], lane-dense


def pack_params(params):
    """Pack per-layer (W [in,out] f32, b [1,out] f32) into one bf16 weight blob
    and one f32 bias block, matching _LAYER_SLOTS."""
    w_slots = []
    b_rows = []
    for (off, in_d, _cout), (w, b) in zip(_LAYER_SLOTS, params):
        slot_rows = _round_up(in_d, ROW_ALIGN)
        wpad = jnp.zeros((slot_rows, W_BLOB_COLS), jnp.float32)
        wpad = wpad.at[:w.shape[0], :w.shape[1]].set(w)
        w_slots.append(wpad)
        bpad = jnp.zeros((W_BLOB_COLS,), jnp.float32).at[:w.shape[1]].set(
            b.reshape(-1))
        b_rows.append(bpad)
    w_blob = jnp.concatenate(w_slots, axis=0).astype(jnp.bfloat16)
    b_blob = jnp.stack(b_rows, axis=0)
    b_blob = jnp.pad(b_blob, ((0, B_BLOB_ROWS - len(b_rows)), (0, 0)))
    return w_blob, b_blob


def net_forward(x, w_blob, b_blob, *, tile_m=256):
    """x: [batch, 8] f32.  Returns [batch, 2] f32."""
    batch = x.shape[0]
    tm = min(tile_m, _round_up(batch, 8))
    padded_batch = _round_up(batch, tm)
    if padded_batch != batch:
        x = jnp.pad(x, ((0, padded_batch - batch), (0, 0)))
    grid = (padded_batch // tm,)

    total_mac = sum(i * o for i, o in zip(LAYER_DIMS[:-1], LAYER_DIMS[1:]))
    cost = pl.CostEstimate(
        flops=2 * padded_batch * total_mac,
        transcendentals=0,
        bytes_accessed=(w_blob.size * 2 + b_blob.size * 4
                        + padded_batch * LAYER_DIMS[0] * 4
                        + padded_batch * OUT_PAD * 4),
    )

    out_padded = pl.pallas_call(
        mlp_kernel,
        out_shape=jax.ShapeDtypeStruct((padded_batch, OUT_PAD), jnp.float32),
        grid_spec=pltpu.PrefetchScalarGridSpec(
            num_scalar_prefetch=0,
            grid=grid,
            in_specs=[
                # activations stream over the batch grid
                pl.BlockSpec((tm, LAYER_DIMS[0]), lambda i: (i, 0)),
                # weights / biases: constant block index -> DMA'd once, resident
                pl.BlockSpec((W_BLOB_ROWS, W_BLOB_COLS), lambda i: (0, 0)),
                pl.BlockSpec((B_BLOB_ROWS, W_BLOB_COLS), lambda i: (0, 0)),
            ],
            out_specs=pl.BlockSpec((tm, OUT_PAD), lambda i: (i, 0)),
        ),
        compiler_params=pltpu.CompilerParams(
            dimension_semantics=("parallel",),   # uses both TCs on v7x
            vmem_limit_bytes=16 << 20,
        ),
        cost_estimate=cost,
    )(x, w_blob, b_blob)

    return out_padded[:batch, :LAYER_DIMS[-1]]


def init_params(key):
    """Deterministic init mimicking PyTorch Linear default (uniform +-1/sqrt(fan_in))."""
    params = []
    for fan_in, fan_out in zip(LAYER_DIMS[:-1], LAYER_DIMS[1:]):
        key, kw, kb = jax.random.split(key, 3)
        bound = 1.0 / jnp.sqrt(jnp.float32(fan_in))
        w = jax.random.uniform(kw, (fan_in, fan_out), jnp.float32,
                               minval=-bound, maxval=bound)
        b = jax.random.uniform(kb, (1, fan_out), jnp.float32,
                               minval=-bound, maxval=bound)
        params.append((w, b))
    return params


if __name__ == "__main__":
    key = jax.random.PRNGKey(0)
    key, kx = jax.random.split(key)

    batch = 8
    x = jax.random.normal(kx, (batch, LAYER_DIMS[0]), dtype=jnp.float32)
    params = init_params(key)
    w_blob, b_blob = pack_params(params)

    out = net_forward(x, w_blob, b_blob)
    out = jax.block_until_ready(out)
    assert out.shape == (batch, 2), out.shape

    # Reference 1: identical mixed-precision math (bf16 weights/activations,
    # f32 accumulation) in plain JAX -> should match tightly.
    h = x
    for k, (w, b) in enumerate(params):
        h = jnp.dot(h.astype(jnp.bfloat16), w.astype(jnp.bfloat16),
                    preferred_element_type=jnp.float32) + b
        if 0 < k < len(params) - 1:
            h = jnp.maximum(h, 0.0)
    assert jnp.allclose(out, h, atol=2e-3, rtol=2e-3)

    # Reference 2: full f32 math of the original module (loose tolerance, since
    # the kernel stores weights/activations in bf16 by design).
    h32 = x
    for k, (w, b) in enumerate(params):
        h32 = h32 @ w + b
        if 0 < k < len(params) - 1:
            h32 = jnp.maximum(h32, 0.0)
    assert jnp.allclose(out, h32, atol=5e-2, rtol=5e-2)

    print("KERNEL_OK")
</pallas_src>

<mosaic_0001>
module attributes {stable_mosaic.version = 11 : i64} {
  func.func @mlp_kernel(%arg0: i32, %arg1: memref<8x8xf32, #tpu.memory_space<vmem>>, %arg2: memref<2512x512xbf16, #tpu.memory_space<vmem>>, %arg3: memref<16x512xf32, #tpu.memory_space<vmem>>, %arg4: memref<8x128xf32, #tpu.memory_space<vmem>>) attributes {dimension_semantics = [#tpu.dimension_semantics<parallel>], iteration_bounds = array<i64: 1>, scalar_prefetch = 0 : i64, scratch_operands = 0 : i64, tpu.core_type = #tpu.core_type<tc>, window_params = [{transform_indices = @transform_0, window_bounds = array<i64: 8, 8>}, {pipeline_mode = #tpu.pipeline_mode<synchronous>, transform_indices = @transform_1, window_bounds = array<i64: 2512, 512>}, {pipeline_mode = #tpu.pipeline_mode<synchronous>, transform_indices = @transform_2, window_bounds = array<i64: 16, 512>}, {transform_indices = @transform_3, window_bounds = array<i64: 8, 128>}]} {
    %c0 = arith.constant 0 : index
    %c0_0 = arith.constant 0 : index
    %0 = vector.load %arg1[%c0, %c0_0] : memref<8x8xf32, #tpu.memory_space<vmem>>, vector<8x8xf32>
    %c0_1 = arith.constant 0 : index
    %c0_2 = arith.constant 0 : index
    %1 = vector.load %arg2[%c0_1, %c0_2] : memref<2512x512xbf16, #tpu.memory_space<vmem>>, vector<8x256xbf16>
    %c0_3 = arith.constant 0 : index
    %c0_4 = arith.constant 0 : index
    %2 = vector.load %arg3[%c0_3, %c0_4] : memref<16x512xf32, #tpu.memory_space<vmem>>, vector<1x256xf32>
    %3 = arith.truncf %0 : vector<8x8xf32> to vector<8x8xbf16>
    %cst = arith.constant dense<0.000000e+00> : vector<8x256xf32>
    %4 = tpu.matmul %3, %1, %cst {dimension_numbers = #tpu.dot_dimension_numbers<[1], [0], [0], [1], [0, 0, 1, 1], [], []>} : vector<8x8xbf16>, vector<8x256xbf16>, vector<8x256xf32> -> vector<8x256xf32>
    %5 = vector.broadcast %2 : vector<1x256xf32> to vector<8x256xf32>
    %6 = arith.addf %4, %5 : vector<8x256xf32>
    %c16 = arith.constant 16 : index
    %c0_5 = arith.constant 0 : index
    %7 = vector.load %arg2[%c16, %c0_5] : memref<2512x512xbf16, #tpu.memory_space<vmem>>, vector<256x512xbf16>
    %c1 = arith.constant 1 : index
    %c0_6 = arith.constant 0 : index
    %8 = vector.load %arg3[%c1, %c0_6] : memref<16x512xf32, #tpu.memory_space<vmem>>, vector<1x512xf32>
    %9 = arith.truncf %6 : vector<8x256xf32> to vector<8x256xbf16>
    %cst_7 = arith.constant dense<0.000000e+00> : vector<8x512xf32>
    %10 = tpu.matmul %9, %7, %cst_7 {dimension_numbers = #tpu.dot_dimension_numbers<[1], [0], [0], [1], [0, 0, 1, 1], [], []>} : vector<8x256xbf16>, vector<256x512xbf16>, vector<8x512xf32> -> vector<8x512xf32>
    %11 = vector.broadcast %8 : vector<1x512xf32> to vector<8x512xf32>
    %12 = arith.addf %10, %11 : vector<8x512xf32>
    %cst_8 = arith.constant 0.000000e+00 : f32
    %13 = vector.broadcast %cst_8 : f32 to vector<8x512xf32>
    %14 = arith.maximumf %12, %13 : vector<8x512xf32>
    %c272 = arith.constant 272 : index
    %c0_9 = arith.constant 0 : index
    %15 = vector.load %arg2[%c272, %c0_9] : memref<2512x512xbf16, #tpu.memory_space<vmem>>, vector<512x512xbf16>
    %c2 = arith.constant 2 : index
    %c0_10 = arith.constant 0 : index
    %16 = vector.load %arg3[%c2, %c0_10] : memref<16x512xf32, #tpu.memory_space<vmem>>, vector<1x512xf32>
    %17 = arith.truncf %14 : vector<8x512xf32> to vector<8x512xbf16>
    %cst_11 = arith.constant dense<0.000000e+00> : vector<8x512xf32>
    %18 = tpu.matmul %17, %15, %cst_11 {dimension_numbers = #tpu.dot_dimension_numbers<[1], [0], [0], [1], [0, 0, 1, 1], [], []>} : vector<8x512xbf16>, vector<512x512xbf16>, vector<8x512xf32> -> vector<8x512xf32>
    %19 = vector.broadcast %16 : vector<1x512xf32> to vector<8x512xf32>
    %20 = arith.addf %18, %19 : vector<8x512xf32>
    %cst_12 = arith.constant 0.000000e+00 : f32
    %21 = vector.broadcast %cst_12 : f32 to vector<8x512xf32>
    %22 = arith.maximumf %20, %21 : vector<8x512xf32>
    %c784 = arith.constant 784 : index
    %c0_13 = arith.constant 0 : index
    %23 = vector.load %arg2[%c784, %c0_13] : memref<2512x512xbf16, #tpu.memory_space<vmem>>, vector<512x512xbf16>
    %c3 = arith.constant 3 : index
    %c0_14 = arith.constant 0 : index
    %24 = vector.load %arg3[%c3, %c0_14] : memref<16x512xf32, #tpu.memory_space<vmem>>, vector<1x512xf32>
    %25 = arith.truncf %22 : vector<8x512xf32> to vector<8x512xbf16>
    %cst_15 = arith.constant dense<0.000000e+00> : vector<8x512xf32>
    %26 = tpu.matmul %25, %23, %cst_15 {dimension_numbers = #tpu.dot_dimension_numbers<[1], [0], [0], [1], [0, 0, 1, 1], [], []>} : vector<8x512xbf16>, vector<512x512xbf16>, vector<8x512xf32> -> vector<8x512xf32>
    %27 = vector.broadcast %24 : vector<1x512xf32> to vector<8x512xf32>
    %28 = arith.addf %26, %27 : vector<8x512xf32>
    %cst_16 = arith.constant 0.000000e+00 : f32
    %29 = vector.broadcast %cst_16 : f32 to vector<8x512xf32>
    %30 = arith.maximumf %28, %29 : vector<8x512xf32>
    %c1296 = arith.constant 1296 : index
    %c0_17 = arith.constant 0 : index
    %31 = vector.load %arg2[%c1296, %c0_17] : memref<2512x512xbf16, #tpu.memory_space<vmem>>, vector<512x256xbf16>
    %c4 = arith.constant 4 : index
    %c0_18 = arith.constant 0 : index
    %32 = vector.load %arg3[%c4, %c0_18] : memref<16x512xf32, #tpu.memory_space<vmem>>, vector<1x256xf32>
    %33 = arith.truncf %30 : vector<8x512xf32> to vector<8x512xbf16>
    %cst_19 = arith.constant dense<0.000000e+00> : vector<8x256xf32>
    %34 = tpu.matmul %33, %31, %cst_19 {dimension_numbers = #tpu.dot_dimension_numbers<[1], [0], [0], [1], [0, 0, 1, 1], [], []>} : vector<8x512xbf16>, vector<512x256xbf16>, vector<8x256xf32> -> vector<8x256xf32>
    %35 = vector.broadcast %32 : vector<1x256xf32> to vector<8x256xf32>
    %36 = arith.addf %34, %35 : vector<8x256xf32>
    %cst_20 = arith.constant 0.000000e+00 : f32
    %37 = vector.broadcast %cst_20 : f32 to vector<8x256xf32>
    %38 = arith.maximumf %36, %37 : vector<8x256xf32>
    %c1808 = arith.constant 1808 : index
    %c0_21 = arith.constant 0 : index
    %39 = vector.load %arg2[%c1808, %c0_21] : memref<2512x512xbf16, #tpu.memory_space<vmem>>, vector<256x256xbf16>
    %c5 = arith.constant 5 : index
    %c0_22 = arith.constant 0 : index
    %40 = vector.load %arg3[%c5, %c0_22] : memref<16x512xf32, #tpu.memory_space<vmem>>, vector<1x256xf32>
    %41 = arith.truncf %38 : vector<8x256xf32> to vector<8x256xbf16>
    %cst_23 = arith.constant dense<0.000000e+00> : vector<8x256xf32>
    %42 = tpu.matmul %41, %39, %cst_23 {dimension_numbers = #tpu.dot_dimension_numbers<[1], [0], [0], [1], [0, 0, 1, 1], [], []>} : vector<8x256xbf16>, vector<256x256xbf16>, vector<8x256xf32> -> vector<8x256xf32>
    %43 = vector.broadcast %40 : vector<1x256xf32> to vector<8x256xf32>
    %44 = arith.addf %42, %43 : vector<8x256xf32>
    %cst_24 = arith.constant 0.000000e+00 : f32
    %45 = vector.broadcast %cst_24 : f32 to vector<8x256xf32>
    %46 = arith.maximumf %44, %45 : vector<8x256xf32>
    %c2064 = arith.constant 2064 : index
    %c0_25 = arith.constant 0 : index
    %47 = vector.load %arg2[%c2064, %c0_25] : memref<2512x512xbf16, #tpu.memory_space<vmem>>, vector<256x128xbf16>
    %c6 = arith.constant 6 : index
    %c0_26 = arith.constant 0 : index
    %48 = vector.load %arg3[%c6, %c0_26] : memref<16x512xf32, #tpu.memory_space<vmem>>, vector<1x128xf32>
    %49 = arith.truncf %46 : vector<8x256xf32> to vector<8x256xbf16>
    %cst_27 = arith.constant dense<0.000000e+00> : vector<8x128xf32>
    %50 = tpu.matmul %49, %47, %cst_27 {dimension_numbers = #tpu.dot_dimension_numbers<[1], [0], [0], [1], [0, 0, 1, 1], [], []>} : vector<8x256xbf16>, vector<256x128xbf16>, vector<8x128xf32> -> vector<8x128xf32>
    %51 = vector.broadcast %48 : vector<1x128xf32> to vector<8x128xf32>
    %52 = arith.addf %50, %51 : vector<8x128xf32>
    %cst_28 = arith.constant 0.000000e+00 : f32
    %53 = vector.broadcast %cst_28 : f32 to vector<8x128xf32>
    %54 = arith.maximumf %52, %53 : vector<8x128xf32>
    %c2320 = arith.constant 2320 : index
    %c0_29 = arith.constant 0 : index
    %55 = vector.load %arg2[%c2320, %c0_29] : memref<2512x512xbf16, #tpu.memory_space<vmem>>, vector<128x64xbf16>
    %c7 = arith.constant 7 : index
    %c0_30 = arith.constant 0 : index
    %56 = vector.load %arg3[%c7, %c0_30] : memref<16x512xf32, #tpu.memory_space<vmem>>, vector<1x64xf32>
    %57 = arith.truncf %54 : vector<8x128xf32> to vector<8x128xbf16>
    %cst_31 = arith.constant dense<0.000000e+00> : vector<8x64xf32>
    %58 = tpu.matmul %57, %55, %cst_31 {dimension_numbers = #tpu.dot_dimension_numbers<[1], [0], [0], [1], [0, 0, 1, 1], [], []>} : vector<8x128xbf16>, vector<128x64xbf16>, vector<8x64xf32> -> vector<8x64xf32>
    %59 = vector.broadcast %56 : vector<1x64xf32> to vector<8x64xf32>
    %60 = arith.addf %58, %59 : vector<8x64xf32>
    %cst_32 = arith.constant 0.000000e+00 : f32
    %61 = vector.broadcast %cst_32 : f32 to vector<8x64xf32>
    %62 = arith.maximumf %60, %61 : vector<8x64xf32>
    %c2448 = arith.constant 2448 : index
    %c0_33 = arith.constant 0 : index
    %63 = vector.load %arg2[%c2448, %c0_33] : memref<2512x512xbf16, #tpu.memory_space<vmem>>, vector<64x128xbf16>
    %c8 = arith.constant 8 : index
    %c0_34 = arith.constant 0 : index
    %64 = vector.load %arg3[%c8, %c0_34] : memref<16x512xf32, #tpu.memory_space<vmem>>, vector<1x128xf32>
    %65 = arith.truncf %62 : vector<8x64xf32> to vector<8x64xbf16>
    %cst_35 = arith.constant dense<0.000000e+00> : vector<8x128xf32>
    %66 = tpu.matmul %65, %63, %cst_35 {dimension_numbers = #tpu.dot_dimension_numbers<[1], [0], [0], [1], [0, 0, 1, 1], [], []>} : vector<8x64xbf16>, vector<64x128xbf16>, vector<8x128xf32> -> vector<8x128xf32>
    %67 = vector.broadcast %64 : vector<1x128xf32> to vector<8x128xf32>
    %68 = arith.addf %66, %67 : vector<8x128xf32>
    %c0_36 = arith.constant 0 : index
    %c0_37 = arith.constant 0 : index
    %69 = vector.load %arg4[%c0_36, %c0_37] : memref<8x128xf32, #tpu.memory_space<vmem>>, vector<8x128xf32>
    tpu.vector_store %arg4[%c0_36, %c0_37], %68 {strides = array<i32>} : memref<8x128xf32, #tpu.memory_space<vmem>>, vector<8x128xf32>,
    return
  }
  func.func @transform_0(%arg0: i32) -> (i32, i32) {
    %c0_i32 = arith.constant 0 : i32
    %c0_i32_0 = arith.constant 0 : i32
    return %arg0, %c0_i32 : i32, i32
  }
  func.func @transform_1(%arg0: i32) -> (i32, i32) {
    %c0_i32 = arith.constant 0 : i32
    %c0_i32_0 = arith.constant 0 : i32
    %c0_i32_1 = arith.constant 0 : i32
    return %c0_i32, %c0_i32_0 : i32, i32
  }
  func.func @transform_2(%arg0: i32) -> (i32, i32) {
    %c0_i32 = arith.constant 0 : i32
    %c0_i32_0 = arith.constant 0 : i32
    %c0_i32_1 = arith.constant 0 : i32
    return %c0_i32, %c0_i32_0 : i32, i32
  }
  func.func @transform_3(%arg0: i32) -> (i32, i32) {
    %c0_i32 = arith.constant 0 : i32
    %c0_i32_0 = arith.constant 0 : i32
    return %arg0, %c0_i32 : i32, i32
  }
}

</mosaic_0001>

<bundles_post_ra>
// kernel: tpu_custom_call.1
= control target key start
LH: loop header
LB: loop body
LE: loop exit
PB: predicated region body
PF: predicated region fallthrough
CT: control target
= control target key end

     0   :  { %8 = vsyncpa [#allocation3], 0  ;;  %s5022_s0 = inlined_call_operand.hbm [shape: f32[8,8], index: 0, kind: input, shape index: {}]   ;;  %s5023_s1 = inlined_call_operand.hbm [shape: bf16[2512,512], index: 1, kind: input, shape index: {}]   ;;  %s5024_s2 = inlined_call_operand.hbm [shape: f32[16,512], index: 2, kind: input, shape index: {}]   ;;  %s5025_s3 = inlined_call_operand.hbm [shape: f32[8,128], index: 3, kind: output, shape index: {}]  }
   0x1   :  { %9 = vsyncpa [#allocation6], 0 }
   0x2   :  { %10 = vsyncpa [#allocation4], 0  ;;  %s4925_s12 = smov [#allocation5]  }
   0x3   :  { %s26_s13 = sshll.u32 %s4925_s12, 4  ;;  %s27_s13 = int_to_ptr.vmem [resolvable:$true] %s26_s13 }
   0x4   :  { %s4847_s14 = scalar_lea.vmem %s27_s13, 80384  ;;  %p4852_p1 = scmp.lt.s32.totalorder %s27_s13, %s27_s13 }
   0x5   :  { %p4848_p0 = scmp.ne.s32.totalorder %s27_s13, %s4847_s14  ;;  %p4853_p2 = scmp.lt.s32.totalorder %s4847_s14, %s4847_s14 }
   0x7   :  { %p4854_p3 = por %p4853_p2, %p4852_p1 }
   0x9   :  { %p4855_p4 = pnand %p4854_p3, %p4848_p0 }
   0xb   :  { %4858 = shalt.err (!%p4855_p4)
}
   0xc   :  { %s4926_s15 = smov 256   ;;  %s4927_s16 = smov 16  }
   0xd   :  { %32 = dma.hbm_to_vmem [thread:$0]  %s5023_s1, 80384, %s27_s13, [#allocation6], %s4926_s15, %s4926_s15, %s4927_s16  }
   0xe   :  { %s4928_s19 = smov [#allocation2]   ;;  %s4929_s21 = smov [#allocation7]  }
   0xf   :  { %s17_s20 = sshll.u32 %s4928_s19, 4  ;;  %s38_s22 = sshll.u32 %s4929_s21, 4  ;;  %s18_s20 = int_to_ptr.vmem [resolvable:$true] %s17_s20  ;;  %s39_s22 = int_to_ptr.vmem [resolvable:$true] %s38_s22 }
  0x10   :  { %s4867_s23 = scalar_lea.vmem %s18_s20, 128  ;;  %p4872_p6 = scmp.lt.s32.totalorder %s18_s20, %s18_s20 }
  0x11   :  { %p4868_p5 = scmp.ne.s32.totalorder %s18_s20, %s4867_s23  ;;  %p4873_p7 = scmp.lt.s32.totalorder %s4867_s23, %s4867_s23 }
  0x13   :  { %p4874_p8 = por %p4873_p7, %p4872_p6 }
  0x15   :  { %p4875_p9 = pnand %p4874_p8, %p4868_p5 }
  0x17   :  { %4878 = shalt.err (!%p4875_p9)
}
  0x18   :  { %20 = dma.hbm_to_vmem [thread:$0]  %s5022_s0, 128, %s18_s20, [#allocation3]  }
  0x19   :  { %s4887_s26 = scalar_lea.vmem %s39_s22, 1024  ;;  %p4892_p11 = scmp.lt.s32.totalorder %s39_s22, %s39_s22 }
  0x1a   :  { %p4888_p10 = scmp.ne.s32.totalorder %s39_s22, %s4887_s26  ;;  %p4893_p12 = scmp.lt.s32.totalorder %s4887_s26, %s4887_s26 }
  0x1c   :  { %p4894_p13 = por %p4893_p12, %p4892_p11 }
  0x1e   :  { %p4895_p0 = pnand %p4894_p13, %p4888_p10 }
  0x20   :  { %4898 = shalt.err (!%p4895_p0)
}
  0x21   :  { %s4930_s1 = smov 512   ;;  %s4931_s27 = smov 32  }
  0x22   :  { %44 = dma.hbm_to_vmem [thread:$0]  %s5024_s2, 1024, %s39_s22, [#allocation6], %s4930_s1, %s4930_s1, %s4931_s27  }
  0x23   :  { %4919 = dma.done.wait [#allocation3], 128  }
  0x24   :  { %4920 = vsyncadd [#allocation3], 4294967168 }
  0x25   :  { %4921 = dma.done.wait [#allocation6], 81408  }
  0x26   :  { %4922 = vsyncadd [#allocation6], 4294885888  ;;  %v4932_v0 = vmov 0   ;;  %v56_v1 = vld [vmem:[#allocation5] sm:$0xff]  ;;  %vm79_vm0 = vcmask 1043456   ;;  %v55_v2 = vld [vmem:[#allocation2] sm:$0xff] }
  0x27   :  { %118 = vmatprep.mubr.bf16.mxu0 %v4932_v0  ;;  %v3658_v3 = vcombine.high %v56_v1, %v56_v1  ;;  %v3657_v4 = vcombine.low %v56_v1, %v56_v1  ;;  %v4187_v5 = vld [vmem:[#allocation5 + $0x104] ss:$16 sps:$4 sm:$0xff]   ;;  %v4189_v6 = vld [vmem:[#allocation5 + $0x108] ss:$16 sps:$4 sm:$0xff]   ;;  %v4191_v7 = vld [vmem:[#allocation5 + $0x10c] ss:$16 sps:$4 sm:$0xff]   ;;  %v58_v9 = vpack.c.bf16 %v55_v2, %v55_v2 }
  0x28   :  { %536 = vmatprep.subr.bf16.mxu1 %v4187_v5  ;;  %v4192_v10 = vld [vmem:[#allocation5 + $0x100] ss:$16 sps:$4 sm:$0xff]   ;;  %vm75_vm1 = vcmask 64512   ;;  %v4193_v11 = vld [vmem:[#allocation5 + $0xe4] ss:$16 sps:$4 sm:$0xff]   ;;  %vm4934_vm2 = vmmov 0  }
  0x29   :  { %3659 = vmatprep.subr.msk.bf16.mxu0 %vm79_vm0, %v3658_v3  ;;  %v81_v8 = vsel %vm79_vm0, %v3657_v4, 0  ;;  %537 = vmatpush1.bf16.msra.mxu1 %v4192_v10  ;;  %v4197_v12 = vld [vmem:[#allocation5 + $0xec] ss:$16 sps:$4 sm:$0xff]   ;;  %v4198_v13 = vld [vmem:[#allocation5 + $0xe0] ss:$16 sps:$4 sm:$0xff]   ;;  %vm3596_vm3 = vcmask 523264  }
  0x2a   :  { %101 = vmatpush1.bf16.msra.mxu0 %v81_v8  ;;  %538 = vmatprep.subr.bf16.mxu1 %v4193_v11  ;;  %v4199_v14 = vld [vmem:[#allocation5 + $0xc4] ss:$16 sps:$4 sm:$0xff]   ;;  %v4195_v15 = vld [vmem:[#allocation5 + $0xe8] ss:$16 sps:$4 sm:$0xff]   ;;  %v4203_v16 = vld [vmem:[#allocation5 + $0xcc] ss:$16 sps:$4 sm:$0xff]  }
  0x2b   :  { %577 = vmatprep.subr.bf16.mxu0 %v4191_v7  ;;  %v4204_v17 = vld [vmem:[#allocation5 + $0xc0] ss:$16 sps:$4 sm:$0xff]   ;;  %v4205_v18 = vld [vmem:[#allocation5 + $0xa4] ss:$16 sps:$4 sm:$0xff]   ;;  %v4201_v19 = vld [vmem:[#allocation5 + $0xc8] ss:$16 sps:$4 sm:$0xff]  }
  0x2c   :  { %v4209_v20 = vld [vmem:[#allocation5 + $0xac] ss:$16 sps:$4 sm:$0xff]   ;;  %v4210_v21 = vld [vmem:[#allocation5 + $0xa0] ss:$16 sps:$4 sm:$0xff]   ;;  %v4211_v22 = vld [vmem:[#allocation5 + $0x84] ss:$16 sps:$4 sm:$0xff]  }
  0x2d   :  { %3660 = vmatmul.mubr.msk.bf16.vlgmr.msra.gmra.mxu0 %vm75_vm1, %v58_v9  ;;  %539 = vmatpush1.bf16.msra.mxu1 %v4198_v13  ;;  %v4207_v23 = vld [vmem:[#allocation5 + $0xa8] ss:$16 sps:$4 sm:$0xff]   ;;  %v4215_v24 = vld [vmem:[#allocation5 + $0x8c] ss:$16 sps:$4 sm:$0xff]   ;;  %v4216_v25 = vld [vmem:[#allocation5 + $0x80] ss:$16 sps:$4 sm:$0xff]   ;;  %v60_v9 = vlaneseq }
  0x2e   :  { %578 = vmatpush1.bf16.msra.mxu0 %v4189_v6  ;;  %540 = vmatprep.subr.bf16.mxu1 %v4199_v14  ;;  %v4217_v26 = vld [vmem:[#allocation5 + $0x64] ss:$16 sps:$4 sm:$0xff]   ;;  %v4213_v27 = vld [vmem:[#allocation5 + $0x88] ss:$16 sps:$4 sm:$0xff]   ;;  %v4221_v28 = vld [vmem:[#allocation5 + $0x6c] ss:$16 sps:$4 sm:$0xff]  }
  0x2f   :  { %579 = vmatprep.subr.bf16.mxu0 %v4197_v12  ;;  %v4222_v29 = vld [vmem:[#allocation5 + $0x60] ss:$16 sps:$4 sm:$0xff]   ;;  %v4223_v30 = vld [vmem:[#allocation5 + $0x44] ss:$16 sps:$4 sm:$0xff]   ;;  %v4219_v31 = vld [vmem:[#allocation5 + $0x68] ss:$16 sps:$4 sm:$0xff]  }
  0x30   :  { %v4227_v32 = vld [vmem:[#allocation5 + $0x4c] ss:$16 sps:$4 sm:$0xff]   ;;  %v4228_v33 = vld [vmem:[#allocation5 + $0x40] ss:$16 sps:$4 sm:$0xff]   ;;  %v4229_v34 = vld [vmem:[#allocation5 + $0x24] ss:$16 sps:$4 sm:$0xff]  }
  0x31   :  { %541 = vmatpush1.bf16.msra.mxu1 %v4204_v17  ;;  %v4225_v35 = vld [vmem:[#allocation5 + $0x48] ss:$16 sps:$4 sm:$0xff]   ;;  %v4233_v36 = vld [vmem:[#allocation5 + $0x2c] ss:$16 sps:$4 sm:$0xff]   ;;  %v4234_v37 = vld [vmem:[#allocation5 + $0x20] ss:$16 sps:$4 sm:$0xff]  }
  0x32   :  { %580 = vmatpush1.bf16.msra.mxu0 %v4195_v15  ;;  %542 = vmatprep.subr.bf16.mxu1 %v4205_v18  ;;  %v4235_v38 = vld [vmem:[#allocation5 + $0x204] ss:$16 sps:$4 sm:$0xff]   ;;  %v4231_v39 = vld [vmem:[#allocation5 + $0x28] ss:$16 sps:$4 sm:$0xff]   ;;  %v4239_v40 = vld [vmem:[#allocation5 + $0x20c] ss:$16 sps:$4 sm:$0xff]  }
  0x33   :  { %581 = vmatprep.subr.bf16.mxu0 %v4203_v16  ;;  %v4240_v41 = vld [vmem:[#allocation5 + $0x200] ss:$16 sps:$4 sm:$0xff]   ;;  %v4241_v42 = vld [vmem:[#allocation5 + $0x1e4] ss:$16 sps:$4 sm:$0xff]   ;;  %v4237_v43 = vld [vmem:[#allocation5 + $0x208] ss:$16 sps:$4 sm:$0xff]  }
  0x34   :  { %v4245_v44 = vld [vmem:[#allocation5 + $0x1ec] ss:$16 sps:$4 sm:$0xff]   ;;  %v4246_v45 = vld [vmem:[#allocation5 + $0x1e0] ss:$16 sps:$4 sm:$0xff]   ;;  %v4243_v46 = vld [vmem:[#allocation5 + $0x1e8] ss:$16 sps:$4 sm:$0xff]  }
  0x35   :  { %543 = vmatpush1.bf16.msra.mxu1 %v4210_v21  ;;  %v4247_v47 = vld [vmem:[#allocation5 + $0x1c4] ss:$16 sps:$4 sm:$0xff]   ;;  %v4251_v48 = vld [vmem:[#allocation5 + $0x1cc] ss:$16 sps:$4 sm:$0xff]   ;;  %v4252_v49 = vld [vmem:[#allocation5 + $0x1c0] ss:$16 sps:$4 sm:$0xff]  }
  0x36   :  { %582 = vmatpush1.bf16.msra.mxu0 %v4201_v19  ;;  %544 = vmatprep.subr.bf16.mxu1 %v4211_v22  ;;  %v4253_v50 = vld [vmem:[#allocation5 + $0x1a4] ss:$16 sps:$4 sm:$0xff]   ;;  %v4249_v51 = vld [vmem:[#allocation5 + $0x1c8] ss:$16 sps:$4 sm:$0xff]   ;;  %v4257_v52 = vld [vmem:[#allocation5 + $0x1ac] ss:$16 sps:$4 sm:$0xff]  }
  0x37   :  { %583 = vmatprep.subr.bf16.mxu0 %v4209_v20  ;;  %v4258_v53 = vld [vmem:[#allocation5 + $0x1a0] ss:$16 sps:$4 sm:$0xff]   ;;  %v4259_v54 = vld [vmem:[#allocation5 + $0x184] ss:$16 sps:$4 sm:$0xff]   ;;  %v4255_v55 = vld [vmem:[#allocation5 + $0x1a8] ss:$16 sps:$4 sm:$0xff]  }
  0x38   :  { %v4263_v56 = vld [vmem:[#allocation5 + $0x18c] ss:$16 sps:$4 sm:$0xff]   ;;  %v4264_v57 = vld [vmem:[#allocation5 + $0x180] ss:$16 sps:$4 sm:$0xff]   ;;  %v4265_v58 = vld [vmem:[#allocation5 + $0x164] ss:$16 sps:$4 sm:$0xff]  }
  0x39   :  { %545 = vmatpush1.bf16.msra.mxu1 %v4216_v25  ;;  %v4261_v59 = vld [vmem:[#allocation5 + $0x188] ss:$16 sps:$4 sm:$0xff]   ;;  %v4269_v60 = vld [vmem:[#allocation5 + $0x16c] ss:$16 sps:$4 sm:$0xff]   ;;  %v4270_v61 = vld [vmem:[#allocation5 + $0x160] ss:$16 sps:$4 sm:$0xff]  }
  0x3a   :  { %584 = vmatpush1.bf16.msra.mxu0 %v4207_v23  ;;  %546 = vmatprep.subr.bf16.mxu1 %v4217_v26  ;;  %v4267_v62 = vld [vmem:[#allocation5 + $0x168] ss:$16 sps:$4 sm:$0xff]   ;;  %v4271_v63 = vld [vmem:[#allocation5 + $0x144] ss:$16 sps:$4 sm:$0xff]   ;;  %v4275_v0 = vld [vmem:[#allocation5 + $0x14c] ss:$16 sps:$4 sm:$0xff]  }
  0x3b   :  { %585 = vmatprep.subr.bf16.mxu0 %v4215_v24  ;;  %v4273_v1 = vld [vmem:[#allocation5 + $0x148] ss:$16 sps:$4 sm:$0xff]   ;;  %v4276_v2 = vld [vmem:[#allocation5 + $0x140] ss:$16 sps:$4 sm:$0xff]   ;;  %v4277_v3 = vld [vmem:[#allocation5 + $0x124] ss:$16 sps:$4 sm:$0xff]  }
  0x3c   :  { %v4281_v4 = vld [vmem:[#allocation5 + $0x12c] ss:$16 sps:$4 sm:$0xff]   ;;  %v4279_v5 = vld [vmem:[#allocation5 + $0x128] ss:$16 sps:$4 sm:$0xff]   ;;  %v4282_v6 = vld [vmem:[#allocation5 + $0x120] ss:$16 sps:$4 sm:$0xff]  }
  0x3d   :  { %547 = vmatpush1.bf16.msra.mxu1 %v4222_v29  ;;  %v4285_v7 = vld [vmem:[#allocation5 + $0x304] ss:$16 sps:$4 sm:$0xff]   ;;  %v4965_v10 = vshrl.u32 %v60_v9, 7  ;;  %v57_v13 = vld [vmem:[#allocation7] ss:$8 sm:$0x3] }
  0x3e   :  { %586 = vmatpush1.bf16.msra.mxu0 %v4213_v27  ;;  %548 = vmatprep.subr.bf16.mxu1 %v4223_v30  ;;  %v4288_v8 = vld [vmem:[#allocation5 + $0x504] ss:$16 sps:$4 sm:$0xff]   ;;  %v4283_v22 = vld [vmem:[#allocation5 + $0x300] ss:$16 sps:$4 sm:$0xff]   ;;  %s4935_s0 = smov [#allocation8]  }
  0x3f   :  { %587 = vmatprep.subr.bf16.mxu0 %v4221_v28  ;;  %v4968_v11 = vsub.s32 0, %v4965_v10  ;;  %v4971_v12 = vsub.s32 1, %v4965_v10  ;;  %v4286_v23 = vld [vmem:[#allocation5 + $0x500] ss:$16 sps:$4 sm:$0xff]   ;;  %v4291_v26 = vld [vmem:[#allocation5 + $0x2e4] ss:$16 sps:$4 sm:$0xff]  }
  0x40   :  { %v4294_v27 = vld [vmem:[#allocation5 + $0x4e4] ss:$16 sps:$4 sm:$0xff]   ;;  %v4289_v28 = vld [vmem:[#allocation5 + $0x2e0] ss:$16 sps:$4 sm:$0xff]   ;;  %s3647_s2 = sshll.u32 %s4935_s0, 4  ;;  %s3648_s2 = int_to_ptr.vmem [resolvable:$true] %s3647_s2 }
  0x41   :  { %549 = vmatpush1.bf16.msra.mxu1 %v4228_v33  ;;  %v63_v14 = vrot.slane %v57_v13, %v4968_v11  ;;  %v67_v15 = vrot.slane %v57_v13, %v4971_v12  ;;  %v4292_v29 = vld [vmem:[#allocation5 + $0x4e0] ss:$16 sps:$4 sm:$0xff]   ;;  %v4297_v30 = vld [vmem:[#allocation5 + $0x2c4] ss:$16 sps:$4 sm:$0xff]   ;;  %s4899_s30 = scalar_lea.vmem %s3648_s2, 128  ;;  %p4904_p2 = scmp.lt.s32.totalorder %s3648_s2, %s3648_s2 }
  0x42   :  { %588 = vmatpush1.bf16.msra.mxu0 %v4219_v31  ;;  %550 = vmatprep.subr.bf16.mxu1 %v4229_v34  ;;  %v4300_v31 = vld [vmem:[#allocation5 + $0x4c4] ss:$16 sps:$4 sm:$0xff]   ;;  %v4298_v33 = vld [vmem:[#allocation5 + $0x4c0] ss:$16 sps:$4 sm:$0xff]   ;;  %p4900_p1 = scmp.ne.s32.totalorder %s3648_s2, %s4899_s30  ;;  %p4905_p3 = scmp.lt.s32.totalorder %s4899_s30, %s4899_s30 }
  0x43   :  { %589 = vmatprep.subr.bf16.mxu0 %v4227_v32  ;;  %v4295_v32 = vld [vmem:[#allocation5 + $0x2c0] ss:$16 sps:$4 sm:$0xff]   ;;  %v4303_v34 = vld [vmem:[#allocation5 + $0x2a4] ss:$16 sps:$4 sm:$0xff]  }
  0x44   :  { %v4358_v9 = vld [vmem:[#allocation5 + $0x580] ss:$16 sps:$4 sm:$0xff]   ;;  %v4363_v13 = vld [vmem:[#allocation5 + $0x364] ss:$16 sps:$4 sm:$0xff]   ;;  %p4906_p4 = por %p4905_p3, %p4904_p2 }
  0x45   :  { %551 = vmatpush1.bf16.msra.mxu1 %v4234_v37  ;;  %v4304_v37 = vld [vmem:[#allocation5 + $0x4a0] ss:$16 sps:$4 sm:$0xff]  }
  0x46   :  { %590 = vmatpush1.bf16.msra.mxu0 %v4225_v35  ;;  %552 = vmatprep.subr.bf16.mxu1 %v4235_v38  ;;  %v4306_v35 = vld [vmem:[#allocation5 + $0x4a4] ss:$16 sps:$4 sm:$0xff]   ;;  %p4907_p5 = pnand %p4906_p4, %p4900_p1 }
  0x47   :  { %591 = vmatprep.subr.bf16.mxu0 %v4233_v36  ;;  %v4301_v36 = vld [vmem:[#allocation5 + $0x2a0] ss:$16 sps:$4 sm:$0xff]   ;;  %v4309_v38 = vld [vmem:[#allocation5 + $0x284] ss:$16 sps:$4 sm:$0xff]  }
  0x49   :  { %553 = vmatpush2.bf16.msra.mxu1 %v4240_v41  ;;  %v4310_v41 = vld [vmem:[#allocation5 + $0x480] ss:$16 sps:$4 sm:$0xff]  }
  0x4a   :  { %592 = vmatpush1.bf16.msra.mxu0 %v4231_v39  ;;  %554 = vmatprep.subr.bf16.mxu1 %v4241_v42  ;;  %v4312_v39 = vld [vmem:[#allocation5 + $0x484] ss:$16 sps:$4 sm:$0xff]  }
  0x4b   :  { %593 = vmatprep.subr.bf16.mxu0 %v4239_v40  ;;  %v4307_v40 = vld [vmem:[#allocation5 + $0x280] ss:$16 sps:$4 sm:$0xff]   ;;  %v4315_v42 = vld [vmem:[#allocation5 + $0x264] ss:$16 sps:$4 sm:$0xff]  }
  0x4d   :  { %555 = vmatpush2.bf16.msra.mxu1 %v4246_v45  ;;  %v4316_v45 = vld [vmem:[#allocation5 + $0x460] ss:$16 sps:$4 sm:$0xff]  }
  0x4e   :  { %594 = vmatpush2.bf16.msra.mxu0 %v4237_v43  ;;  %556 = vmatprep.subr.bf16.mxu1 %v4247_v47  ;;  %v4318_v43 = vld [vmem:[#allocation5 + $0x464] ss:$16 sps:$4 sm:$0xff]  }
  0x4f   :  { %595 = vmatprep.subr.bf16.mxu0 %v4245_v44  ;;  %v4313_v44 = vld [vmem:[#allocation5 + $0x260] ss:$16 sps:$4 sm:$0xff]   ;;  %v4324_v47 = vld [vmem:[#allocation5 + $0x444] ss:$16 sps:$4 sm:$0xff]  }
  0x51   :  { %557 = vmatpush2.bf16.msra.mxu1 %v4252_v49  ;;  %v4322_v49 = vld [vmem:[#allocation5 + $0x440] ss:$16 sps:$4 sm:$0xff]  }
  0x52   :  { %596 = vmatpush2.bf16.msra.mxu0 %v4243_v46  ;;  %558 = vmatprep.subr.bf16.mxu1 %v4253_v50  ;;  %v4321_v46 = vld [vmem:[#allocation5 + $0x244] ss:$16 sps:$4 sm:$0xff]  }
  0x53   :  { %597 = vmatprep.subr.bf16.mxu0 %v4251_v48  ;;  %v4319_v48 = vld [vmem:[#allocation5 + $0x240] ss:$16 sps:$4 sm:$0xff]   ;;  %v4327_v50 = vld [vmem:[#allocation5 + $0x224] ss:$16 sps:$4 sm:$0xff]  }
  0x55   :  { %559 = vmatpush2.bf16.msra.mxu1 %v4258_v53  ;;  %v4328_v53 = vld [vmem:[#allocation5 + $0x420] ss:$16 sps:$4 sm:$0xff]  }
  0x56   :  { %598 = vmatpush2.bf16.msra.mxu0 %v4249_v51  ;;  %560 = vmatprep.subr.bf16.mxu1 %v4259_v54  ;;  %v4330_v51 = vld [vmem:[#allocation5 + $0x424] ss:$16 sps:$4 sm:$0xff]  }
  0x57   :  { %599 = vmatprep.subr.bf16.mxu0 %v4257_v52  ;;  %v4325_v52 = vld [vmem:[#allocation5 + $0x220] ss:$16 sps:$4 sm:$0xff]   ;;  %v4333_v54 = vld [vmem:[#allocation5 + $0x404] ss:$16 sps:$4 sm:$0xff]  }
  0x59   :  { %561 = vmatpush2.bf16.msra.mxu1 %v4264_v57  ;;  %v4334_v57 = vld [vmem:[#allocation5 + $0x600] ss:$16 sps:$4 sm:$0xff]  }
  0x5a   :  { %600 = vmatpush2.bf16.msra.mxu0 %v4255_v55  ;;  %562 = vmatprep.subr.bf16.mxu1 %v4265_v58  ;;  %v4336_v55 = vld [vmem:[#allocation5 + $0x604] ss:$16 sps:$4 sm:$0xff]  }
  0x5b   :  { %601 = vmatprep.subr.bf16.mxu0 %v4263_v56  ;;  %v4331_v56 = vld [vmem:[#allocation5 + $0x400] ss:$16 sps:$4 sm:$0xff]   ;;  %v4339_v58 = vld [vmem:[#allocation5 + $0x3e4] ss:$16 sps:$4 sm:$0xff]  }
  0x5d   :  { %563 = vmatpush2.bf16.msra.mxu1 %v4270_v61  ;;  %v4340_v61 = vld [vmem:[#allocation5 + $0x5e0] ss:$16 sps:$4 sm:$0xff]  }
  0x5e   :  { %602 = vmatpush2.bf16.msra.mxu0 %v4261_v59  ;;  %564 = vmatprep.subr.bf16.mxu1 %v4271_v63  ;;  %v4342_v59 = vld [vmem:[#allocation5 + $0x5e4] ss:$16 sps:$4 sm:$0xff]  }
  0x5f   :  { %603 = vmatprep.subr.bf16.mxu0 %v4269_v60  ;;  %v4337_v60 = vld [vmem:[#allocation5 + $0x3e0] ss:$16 sps:$4 sm:$0xff]   ;;  %v4348_v63 = vld [vmem:[#allocation5 + $0x5c4] ss:$16 sps:$4 sm:$0xff]  }
  0x61   :  { %565 = vmatpush2.bf16.msra.mxu1 %v4276_v2  ;;  %v4351_v2 = vld [vmem:[#allocation5 + $0x3a4] ss:$16 sps:$4 sm:$0xff]  }
  0x62   :  { %604 = vmatpush2.bf16.msra.mxu0 %v4267_v62  ;;  %566 = vmatprep.subr.bf16.mxu1 %v4277_v3  ;;  %v4345_v62 = vld [vmem:[#allocation5 + $0x3c4] ss:$16 sps:$4 sm:$0xff]  }
  0x63   :  { %605 = vmatprep.subr.bf16.mxu0 %v4275_v0  ;;  %v4343_v0 = vld [vmem:[#allocation5 + $0x3c0] ss:$16 sps:$4 sm:$0xff]   ;;  %v4354_v3 = vld [vmem:[#allocation5 + $0x5a4] ss:$16 sps:$4 sm:$0xff]  }
  0x65   :  { %567 = vmatpush2.bf16.msra.mxu1 %v4282_v6  ;;  %v4357_v6 = vld [vmem:[#allocation5 + $0x384] ss:$16 sps:$4 sm:$0xff]  }
  0x66   :  { %606 = vmatpush2.bf16.msra.mxu0 %v4273_v1  ;;  %1417 = vmatprep.subr.bf16.mxu1 %v4285_v7  ;;  %v4346_v1 = vld [vmem:[#allocation5 + $0x5c0] ss:$16 sps:$4 sm:$0xff]   ;;  %v4360_v7 = vld [vmem:[#allocation5 + $0x584] ss:$16 sps:$4 sm:$0xff]  }
  0x67   :  { %607 = vmatprep.subr.bf16.mxu0 %v4281_v4  ;;  %v4349_v4 = vld [vmem:[#allocation5 + $0x3a0] ss:$16 sps:$4 sm:$0xff]  }
  0x6a   :  { %608 = vmatpush2.bf16.msra.mxu0 %v4279_v5  ;;  %v4352_v5 = vld [vmem:[#allocation5 + $0x5a0] ss:$16 sps:$4 sm:$0xff]  }
  0x6b   :  { %1458 = vmatprep.subr.bf16.mxu0 %v4288_v8  ;;  %v4355_v8 = vld [vmem:[#allocation5 + $0x380] ss:$16 sps:$4 sm:$0xff]  }
  0xed   :  { %v120_v16 = vpop.f32.mrf.mxu0 }
  0xee   :  { %v121_v17 = vadd.f32 %v120_v16, %v63_v14  ;;  %v4366_v14 = vld [vmem:[#allocation5 + $0x564] ss:$16 sps:$4 sm:$0xff]   ;;  %v4364_v16 = vld [vmem:[#allocation5 + $0x560] ss:$16 sps:$4 sm:$0xff]  }
  0xef   :  { %v122_v18 = vpop.f32.mrf.mxu0 }
  0xf0   :  { %v123_v19 = vadd.f32 %v122_v18, %v67_v15  ;;  %v193_v24 = vpack.c.bf16 %v121_v17, %v121_v17  ;;  %v4361_v15 = vld [vmem:[#allocation5 + $0x360] ss:$16 sps:$4 sm:$0xff]   ;;  %v4369_v17 = vld [vmem:[#allocation5 + $0x344] ss:$16 sps:$4 sm:$0xff]  }
  0xf1   :  { %v124_v20 = vpop.f32.mrf.mxu0  ;;  %v4372_v18 = vld [vmem:[#allocation5 + $0x544] ss:$16 sps:$4 sm:$0xff]  }
  0xf2   :  { %v194_v21 = vpack.c.bf16 %v123_v19, %v123_v19  ;;  %v4367_v19 = vld [vmem:[#allocation5 + $0x340] ss:$16 sps:$4 sm:$0xff]  }
  0xf3   :  { %v125_v25 = vpop.f32.mrf.mxu0  ;;  %v4370_v20 = vld [vmem:[#allocation5 + $0x540] ss:$16 sps:$4 sm:$0xff]  }
  0xf4   :  { %568 = vmatprep.mubr.bf16.mxu1 %v194_v21  ;;  %609 = vmatprep.mubr.bf16.mxu0 %v194_v21  ;;  %v4375_v21 = vld [vmem:[#allocation5 + $0x324] ss:$16 sps:$4 sm:$0xff]   ;;  %v4381_v25 = vld [vmem:[#allocation5 + $0x30c] ss:$16 sps:$4 sm:$0xff]  }
  0xf5   :  { %569 = vmatmul.mubr.bf16.vlgmr.msra.gmra.mxu1 %v193_v24  ;;  %610 = vmatmul.mubr.bf16.vlgmr.msra.gmra.mxu0 %v193_v24  ;;  %v4376_v24 = vld [vmem:[#allocation5 + $0x520] ss:$16 sps:$4 sm:$0xff]  }
  0xf6   :  { %1418 = vmatpush1.bf16.msra.mxu1 %v4283_v22  ;;  %1459 = vmatpush1.bf16.msra.mxu0 %v4286_v23  ;;  %v4378_v22 = vld [vmem:[#allocation5 + $0x524] ss:$16 sps:$4 sm:$0xff]   ;;  %v4373_v23 = vld [vmem:[#allocation5 + $0x320] ss:$16 sps:$4 sm:$0xff]  }
  0xf7   :  { %1419 = vmatprep.subr.bf16.mxu1 %v4291_v26  ;;  %1460 = vmatprep.subr.bf16.mxu0 %v4294_v27  ;;  %v4384_v26 = vld [vmem:[#allocation5 + $0x50c] ss:$16 sps:$4 sm:$0xff]   ;;  %v4976_v27 = vsub.s32 2, %v4965_v10 }
  0xfa   :  { %1420 = vmatpush1.bf16.msra.mxu1 %v4289_v28  ;;  %1461 = vmatpush1.bf16.msra.mxu0 %v4292_v29  ;;  %v192_v28 = vld [vmem:[#allocation7 + $0x1] ss:$8 sm:$0xf]  ;;  %v4979_v29 = vsub.s32 3, %v4965_v10 }
  0xfb   :  { %1421 = vmatprep.subr.bf16.mxu1 %v4297_v30  ;;  %1462 = vmatprep.subr.bf16.mxu0 %v4300_v31  ;;  %v199_v30 = vrot.slane %v192_v28, %v4968_v11  ;;  %v207_v31 = vrot.slane %v192_v28, %v4976_v27 }
  0xfe   :  { %1422 = vmatpush1.bf16.msra.mxu1 %v4295_v32  ;;  %1463 = vmatpush1.bf16.msra.mxu0 %v4298_v33  ;;  %v203_v32 = vrot.slane %v192_v28, %v4971_v12  ;;  %v211_v33 = vrot.slane %v192_v28, %v4979_v29  ;;  %v4438_v28 = vld [vmem:[#allocation5 + $0x5ec] ss:$16 sps:$4 sm:$0xff]  }
  0xff   :  { %1423 = vmatprep.subr.bf16.mxu1 %v4303_v34  ;;  %1464 = vmatprep.subr.bf16.mxu0 %v4306_v35 }
 0x102   :  { %1424 = vmatpush1.bf16.msra.mxu1 %v4301_v36  ;;  %1465 = vmatpush1.bf16.msra.mxu0 %v4304_v37 }
 0x103   :  { %1425 = vmatprep.subr.bf16.mxu1 %v4309_v38  ;;  %1466 = vmatprep.subr.bf16.mxu0 %v4312_v39 }
 0x106   :  { %1426 = vmatpush1.bf16.msra.mxu1 %v4307_v40  ;;  %1467 = vmatpush1.bf16.msra.mxu0 %v4310_v41 }
 0x107   :  { %1427 = vmatprep.subr.bf16.mxu1 %v4315_v42  ;;  %1468 = vmatprep.subr.bf16.mxu0 %v4318_v43 }
 0x10a   :  { %1428 = vmatpush1.bf16.msra.mxu1 %v4313_v44  ;;  %1469 = vmatpush1.bf16.msra.mxu0 %v4316_v45 }
 0x10b   :  { %1429 = vmatprep.subr.bf16.mxu1 %v4321_v46  ;;  %1470 = vmatprep.subr.bf16.mxu0 %v4324_v47 }
 0x10e   :  { %1430 = vmatpush1.bf16.msra.mxu1 %v4319_v48  ;;  %1471 = vmatpush1.bf16.msra.mxu0 %v4322_v49 }
 0x10f   :  { %1431 = vmatprep.subr.bf16.mxu1 %v4327_v50  ;;  %1472 = vmatprep.subr.bf16.mxu0 %v4330_v51  ;;  %v4379_v51 = vld [vmem:[#allocation5 + $0x308] ss:$16 sps:$4 sm:$0xff]  }
 0x112   :  { %1432 = vmatpush1.bf16.msra.mxu1 %v4325_v52  ;;  %1473 = vmatpush1.bf16.msra.mxu0 %v4328_v53  ;;  %v4382_v52 = vld [vmem:[#allocation5 + $0x508] ss:$16 sps:$4 sm:$0xff]  }
 0x113   :  { %1433 = vmatprep.subr.bf16.mxu1 %v4333_v54  ;;  %1474 = vmatprep.subr.bf16.mxu0 %v4336_v55  ;;  %v4387_v55 = vld [vmem:[#allocation5 + $0x2ec] ss:$16 sps:$4 sm:$0xff]  }
 0x116   :  { %1434 = vmatpush2.bf16.msra.mxu1 %v4331_v56  ;;  %1475 = vmatpush2.bf16.msra.mxu0 %v4334_v57  ;;  %v4390_v56 = vld [vmem:[#allocation5 + $0x4ec] ss:$16 sps:$4 sm:$0xff]   ;;  %v4385_v57 = vld [vmem:[#allocation5 + $0x2e8] ss:$16 sps:$4 sm:$0xff]  }
 0x117   :  { %1435 = vmatprep.subr.bf16.mxu1 %v4339_v58  ;;  %1476 = vmatprep.subr.bf16.mxu0 %v4342_v59  ;;  %v4388_v58 = vld [vmem:[#allocation5 + $0x4e8] ss:$16 sps:$4 sm:$0xff]   ;;  %v4393_v59 = vld [vmem:[#allocation5 + $0x2cc] ss:$16 sps:$4 sm:$0xff]  }
 0x11a   :  { %1436 = vmatpush2.bf16.msra.mxu1 %v4337_v60  ;;  %1477 = vmatpush2.bf16.msra.mxu0 %v4340_v61  ;;  %v4396_v60 = vld [vmem:[#allocation5 + $0x4cc] ss:$16 sps:$4 sm:$0xff]   ;;  %v4391_v61 = vld [vmem:[#allocation5 + $0x2c8] ss:$16 sps:$4 sm:$0xff]  }
 0x11b   :  { %1437 = vmatprep.subr.bf16.mxu1 %v4345_v62  ;;  %1478 = vmatprep.subr.bf16.mxu0 %v4348_v63  ;;  %v4394_v62 = vld [vmem:[#allocation5 + $0x4c8] ss:$16 sps:$4 sm:$0xff]   ;;  %v4399_v63 = vld [vmem:[#allocation5 + $0x2ac] ss:$16 sps:$4 sm:$0xff]  }
 0x11e   :  { %1438 = vmatpush2.bf16.msra.mxu1 %v4343_v0  ;;  %1479 = vmatpush2.bf16.msra.mxu0 %v4346_v1  ;;  %v4402_v0 = vld [vmem:[#allocation5 + $0x4ac] ss:$16 sps:$4 sm:$0xff]   ;;  %v4397_v1 = vld [vmem:[#allocation5 + $0x2a8] ss:$16 sps:$4 sm:$0xff]  }
 0x11f   :  { %1439 = vmatprep.subr.bf16.mxu1 %v4351_v2  ;;  %1480 = vmatprep.subr.bf16.mxu0 %v4354_v3  ;;  %v4400_v2 = vld [vmem:[#allocation5 + $0x4a8] ss:$16 sps:$4 sm:$0xff]   ;;  %v4405_v3 = vld [vmem:[#allocation5 + $0x28c] ss:$16 sps:$4 sm:$0xff]  }
 0x122   :  { %1440 = vmatpush2.bf16.msra.mxu1 %v4349_v4  ;;  %1481 = vmatpush2.bf16.msra.mxu0 %v4352_v5  ;;  %v4408_v4 = vld [vmem:[#allocation5 + $0x48c] ss:$16 sps:$4 sm:$0xff]   ;;  %v4403_v5 = vld [vmem:[#allocation5 + $0x288] ss:$16 sps:$4 sm:$0xff]  }
 0x123   :  { %1441 = vmatprep.subr.bf16.mxu1 %v4357_v6  ;;  %1482 = vmatprep.subr.bf16.mxu0 %v4360_v7  ;;  %v4406_v6 = vld [vmem:[#allocation5 + $0x488] ss:$16 sps:$4 sm:$0xff]   ;;  %v4411_v7 = vld [vmem:[#allocation5 + $0x26c] ss:$16 sps:$4 sm:$0xff]  }
 0x126   :  { %1442 = vmatpush2.bf16.msra.mxu1 %v4355_v8  ;;  %1483 = vmatpush2.bf16.msra.mxu0 %v4358_v9  ;;  %v4414_v8 = vld [vmem:[#allocation5 + $0x46c] ss:$16 sps:$4 sm:$0xff]   ;;  %v4409_v9 = vld [vmem:[#allocation5 + $0x268] ss:$16 sps:$4 sm:$0xff]  }
 0x127   :  { %1443 = vmatprep.subr.bf16.mxu1 %v4363_v13  ;;  %1484 = vmatprep.subr.bf16.mxu0 %v4366_v14  ;;  %v4412_v13 = vld [vmem:[#allocation5 + $0x468] ss:$16 sps:$4 sm:$0xff]   ;;  %v4417_v14 = vld [vmem:[#allocation5 + $0x24c] ss:$16 sps:$4 sm:$0xff]  }
 0x12a   :  { %1444 = vmatpush2.bf16.msra.mxu1 %v4361_v15  ;;  %1485 = vmatpush2.bf16.msra.mxu0 %v4364_v16  ;;  %v4420_v15 = vld [vmem:[#allocation5 + $0x44c] ss:$16 sps:$4 sm:$0xff]   ;;  %v4415_v16 = vld [vmem:[#allocation5 + $0x248] ss:$16 sps:$4 sm:$0xff]  }
 0x12b   :  { %1445 = vmatprep.subr.bf16.mxu1 %v4369_v17  ;;  %1486 = vmatprep.subr.bf16.mxu0 %v4372_v18  ;;  %v4418_v17 = vld [vmem:[#allocation5 + $0x448] ss:$16 sps:$4 sm:$0xff]   ;;  %v4423_v18 = vld [vmem:[#allocation5 + $0x22c] ss:$16 sps:$4 sm:$0xff]  }
 0x12e   :  { %1446 = vmatpush2.bf16.msra.mxu1 %v4367_v19  ;;  %1487 = vmatpush2.bf16.msra.mxu0 %v4370_v20  ;;  %v4426_v19 = vld [vmem:[#allocation5 + $0x42c] ss:$16 sps:$4 sm:$0xff]   ;;  %v4421_v20 = vld [vmem:[#allocation5 + $0x228] ss:$16 sps:$4 sm:$0xff]  }
 0x12f   :  { %1447 = vmatprep.subr.bf16.mxu1 %v4375_v21  ;;  %1488 = vmatprep.subr.bf16.mxu0 %v4378_v22  ;;  %v4424_v21 = vld [vmem:[#allocation5 + $0x428] ss:$16 sps:$4 sm:$0xff]   ;;  %v4429_v22 = vld [vmem:[#allocation5 + $0x40c] ss:$16 sps:$4 sm:$0xff]  }
 0x132   :  { %1448 = vmatpush2.bf16.msra.mxu1 %v4373_v23  ;;  %1489 = vmatpush2.bf16.msra.mxu0 %v4376_v24  ;;  %v4432_v23 = vld [vmem:[#allocation5 + $0x60c] ss:$16 sps:$4 sm:$0xff]   ;;  %v4427_v24 = vld [vmem:[#allocation5 + $0x408] ss:$16 sps:$4 sm:$0xff]  }
 0x133   :  { %1499 = vmatprep.subr.bf16.mxu1 %v4381_v25  ;;  %1540 = vmatprep.subr.bf16.mxu0 %v4384_v26  ;;  %v4430_v25 = vld [vmem:[#allocation5 + $0x608] ss:$16 sps:$4 sm:$0xff]   ;;  %v4435_v26 = vld [vmem:[#allocation5 + $0x3ec] ss:$16 sps:$4 sm:$0xff]  }
 0x1b5   :  { %v570_v34 = vpop.f32.mrf.mxu1  ;;  %v611_v35 = vpop.f32.mrf.mxu0 }
 0x1b6   :  { %v571_v36 = vadd.f32 %v570_v34, %v199_v30  ;;  %v612_v37 = vadd.f32 %v611_v35, %v207_v31  ;;  %v4433_v30 = vld [vmem:[#allocation5 + $0x3e8] ss:$16 sps:$4 sm:$0xff]  }
 0x1b7   :  { %v572_v38 = vpop.f32.mrf.mxu1  ;;  %v613_v39 = vpop.f32.mrf.mxu0  ;;  %v4436_v31 = vld [vmem:[#allocation5 + $0x5e8] ss:$16 sps:$4 sm:$0xff]  }
 0x1b8   :  { %v573_v40 = vadd.f32 %v572_v38, %v203_v32  ;;  %v614_v41 = vadd.f32 %v613_v39, %v211_v33  ;;  %v618_v42 = vmax.f32 %v571_v36, 0.0  ;;  %v620_v43 = vmax.f32 %v612_v37, 0.0  ;;  %v4441_v32 = vld [vmem:[#allocation5 + $0x3cc] ss:$16 sps:$4 sm:$0xff]   ;;  %v4439_v34 = vld [vmem:[#allocation5 + $0x3c8] ss:$16 sps:$4 sm:$0xff]  }
 0x1b9   :  { %v574_v10 = vpop.f32.mrf.mxu1  ;;  %v615_v44 = vpop.f32.mrf.mxu0  ;;  %v4444_v33 = vld [vmem:[#allocation5 + $0x5cc] ss:$16 sps:$4 sm:$0xff]   ;;  %v4442_v35 = vld [vmem:[#allocation5 + $0x5c8] ss:$16 sps:$4 sm:$0xff]  }
 0x1ba   :  { %v619_v45 = vmax.f32 %v573_v40, 0.0  ;;  %v621_v46 = vmax.f32 %v614_v41, 0.0  ;;  %v4985_v53 = vpack.c.bf16 %v618_v42, %v618_v42  ;;  %v4987_v54 = vpack.c.bf16 %v620_v43, %v620_v43  ;;  %v4447_v36 = vld [vmem:[#allocation5 + $0x3ac] ss:$16 sps:$4 sm:$0xff]   ;;  %v4445_v38 = vld [vmem:[#allocation5 + $0x3a8] ss:$16 sps:$4 sm:$0xff]  }
 0x1bb   :  { %v575_v47 = vpop.f32.mrf.mxu1  ;;  %v616_v48 = vpop.f32.mrf.mxu0  ;;  %v4450_v37 = vld [vmem:[#allocation5 + $0x5ac] ss:$16 sps:$4 sm:$0xff]   ;;  %v4448_v39 = vld [vmem:[#allocation5 + $0x5a8] ss:$16 sps:$4 sm:$0xff]  }
 0x1bc   :  { %v753_v49 = vpack.c.bf16 %v619_v45, %v619_v45  ;;  %v755_v50 = vpack.c.bf16 %v621_v46, %v621_v46  ;;  %v4453_v40 = vld [vmem:[#allocation5 + $0x38c] ss:$16 sps:$4 sm:$0xff]   ;;  %v4451_v42 = vld [vmem:[#allocation5 + $0x388] ss:$16 sps:$4 sm:$0xff]  }
 0x1bd   :  { %v4456_v41 = vld [vmem:[#allocation5 + $0x58c] ss:$16 sps:$4 sm:$0xff]   ;;  %v4454_v43 = vld [vmem:[#allocation5 + $0x588] ss:$16 sps:$4 sm:$0xff]  }
 0x1be   :  { %1449 = vmatprep.mubr.bf16.mxu1 %v753_v49  ;;  %1490 = vmatprep.mubr.bf16.mxu0 %v755_v50  ;;  %v4459_v10 = vld [vmem:[#allocation5 + $0x36c] ss:$16 sps:$4 sm:$0xff]   ;;  %v4457_v45 = vld [vmem:[#allocation5 + $0x368] ss:$16 sps:$4 sm:$0xff]  }
 0x1bf   :  { %1450 = vmatmul.mubr.bf16.vlgmr.msra.gmra.mxu1 %v4985_v53  ;;  %1491 = vmatmul.mubr.bf16.vlgmr.msra.gmra.mxu0 %v4987_v54  ;;  %v4462_v44 = vld [vmem:[#allocation5 + $0x56c] ss:$16 sps:$4 sm:$0xff]   ;;  %v4460_v46 = vld [vmem:[#allocation5 + $0x568] ss:$16 sps:$4 sm:$0xff]  }
 0x1c0   :  { %1500 = vmatpush1.bf16.msra.mxu1 %v4379_v51  ;;  %1541 = vmatpush1.bf16.msra.mxu0 %v4382_v52  ;;  %v4465_v47 = vld [vmem:[#allocation5 + $0x34c] ss:$16 sps:$4 sm:$0xff]  }
 0x1c1   :  { %1531 = vmatprep.mubr.bf16.mxu1 %v753_v49  ;;  %1572 = vmatprep.mubr.bf16.mxu0 %v755_v50  ;;  %v4468_v48 = vld [vmem:[#allocation5 + $0x54c] ss:$16 sps:$4 sm:$0xff]   ;;  %v4463_v49 = vld [vmem:[#allocation5 + $0x348] ss:$16 sps:$4 sm:$0xff]  }
 0x1c2   :  { %1501 = vmatprep.subr.bf16.mxu1 %v4387_v55  ;;  %1542 = vmatprep.subr.bf16.mxu0 %v4390_v56  ;;  %v4466_v50 = vld [vmem:[#allocation5 + $0x548] ss:$16 sps:$4 sm:$0xff]   ;;  %v4471_v51 = vld [vmem:[#allocation5 + $0x32c] ss:$16 sps:$4 sm:$0xff]  }
 0x1c3   :  { %v4474_v52 = vld [vmem:[#allocation5 + $0x52c] ss:$16 sps:$4 sm:$0xff]   ;;  %v4469_v55 = vld [vmem:[#allocation5 + $0x328] ss:$16 sps:$4 sm:$0xff]  }
 0x1c4   :  { %1502 = vmatpush1.bf16.msra.mxu1 %v4385_v57  ;;  %1543 = vmatpush1.bf16.msra.mxu0 %v4388_v58  ;;  %v4472_v56 = vld [vmem:[#allocation5 + $0x528] ss:$16 sps:$4 sm:$0xff]   ;;  %v4477_v57 = vld [vmem:[#allocation5 + $0x704] ss:$16 sps:$4 sm:$0xff]   ;;  %v4475_v58 = vld [vmem:[#allocation5 + $0x700] ss:$16 sps:$4 sm:$0xff]  }
 0x1c5   :  { %1503 = vmatprep.subr.bf16.mxu1 %v4393_v59  ;;  %1544 = vmatprep.subr.bf16.mxu0 %v4396_v60  ;;  %v4480_v59 = vld [vmem:[#allocation5 + $0x6e4] ss:$16 sps:$4 sm:$0xff]   ;;  %v4478_v60 = vld [vmem:[#allocation5 + $0x6e0] ss:$16 sps:$4 sm:$0xff]  }
 0x1c8   :  { %1504 = vmatpush1.bf16.msra.mxu1 %v4391_v61  ;;  %1545 = vmatpush1.bf16.msra.mxu0 %v4394_v62  ;;  %v4483_v61 = vld [vmem:[#allocation5 + $0x6c4] ss:$16 sps:$4 sm:$0xff]   ;;  %v4481_v62 = vld [vmem:[#allocation5 + $0x6c0] ss:$16 sps:$4 sm:$0xff]  }
 0x1c9   :  { %1505 = vmatprep.subr.bf16.mxu1 %v4399_v63  ;;  %1546 = vmatprep.subr.bf16.mxu0 %v4402_v0  ;;  %v4486_v63 = vld [vmem:[#allocation5 + $0x6a4] ss:$16 sps:$4 sm:$0xff]   ;;  %v4484_v0 = vld [vmem:[#allocation5 + $0x6a0] ss:$16 sps:$4 sm:$0xff]  }
 0x1cc   :  { %1506 = vmatpush1.bf16.msra.mxu1 %v4397_v1  ;;  %1547 = vmatpush1.bf16.msra.mxu0 %v4400_v2  ;;  %v4523_v1 = vld [vmem:[#allocation5 + $0x900] ss:$16 sps:$4 sm:$0xff]   ;;  %v4525_v2 = vld [vmem:[#allocation5 + $0x904] ss:$16 sps:$4 sm:$0xff]  }
 0x1cd   :  { %1507 = vmatprep.subr.bf16.mxu1 %v4405_v3  ;;  %1548 = vmatprep.subr.bf16.mxu0 %v4408_v4  ;;  %v4489_v3 = vld [vmem:[#allocation5 + $0x684] ss:$16 sps:$4 sm:$0xff]   ;;  %v4529_v4 = vld [vmem:[#allocation5 + $0x8e0] ss:$16 sps:$4 sm:$0xff]  }
 0x1d0   :  { %1508 = vmatpush1.bf16.msra.mxu1 %v4403_v5  ;;  %1549 = vmatpush1.bf16.msra.mxu0 %v4406_v6  ;;  %v4492_v5 = vld [vmem:[#allocation5 + $0x664] ss:$16 sps:$4 sm:$0xff]   ;;  %v4490_v6 = vld [vmem:[#allocation5 + $0x660] ss:$16 sps:$4 sm:$0xff]  }
 0x1d1   :  { %1509 = vmatprep.subr.bf16.mxu1 %v4411_v7  ;;  %1550 = vmatprep.subr.bf16.mxu0 %v4414_v8  ;;  %v4535_v7 = vld [vmem:[#allocation5 + $0x8c0] ss:$16 sps:$4 sm:$0xff]   ;;  %v4537_v8 = vld [vmem:[#allocation5 + $0x8c4] ss:$16 sps:$4 sm:$0xff]  }
 0x1d4   :  { %1510 = vmatpush1.bf16.msra.mxu1 %v4409_v9  ;;  %1551 = vmatpush1.bf16.msra.mxu0 %v4412_v13  ;;  %v4495_v9 = vld [vmem:[#allocation5 + $0x644] ss:$16 sps:$4 sm:$0xff]   ;;  %v4493_v13 = vld [vmem:[#allocation5 + $0x640] ss:$16 sps:$4 sm:$0xff]  }
 0x1d5   :  { %1511 = vmatprep.subr.bf16.mxu1 %v4417_v14  ;;  %1552 = vmatprep.subr.bf16.mxu0 %v4420_v15  ;;  %v4541_v14 = vld [vmem:[#allocation5 + $0x8a0] ss:$16 sps:$4 sm:$0xff]   ;;  %v4543_v15 = vld [vmem:[#allocation5 + $0x8a4] ss:$16 sps:$4 sm:$0xff]  }
 0x1d8   :  { %1512 = vmatpush1.bf16.msra.mxu1 %v4415_v16  ;;  %1553 = vmatpush1.bf16.msra.mxu0 %v4418_v17  ;;  %v4498_v16 = vld [vmem:[#allocation5 + $0x624] ss:$16 sps:$4 sm:$0xff]   ;;  %v4496_v17 = vld [vmem:[#allocation5 + $0x620] ss:$16 sps:$4 sm:$0xff]  }
 0x1d9   :  { %1513 = vmatprep.subr.bf16.mxu1 %v4423_v18  ;;  %1554 = vmatprep.subr.bf16.mxu0 %v4426_v19  ;;  %v4547_v18 = vld [vmem:[#allocation5 + $0x880] ss:$16 sps:$4 sm:$0xff]   ;;  %v4549_v19 = vld [vmem:[#allocation5 + $0x884] ss:$16 sps:$4 sm:$0xff]  }
 0x1dc   :  { %1514 = vmatpush1.bf16.msra.mxu1 %v4421_v20  ;;  %1555 = vmatpush1.bf16.msra.mxu0 %v4424_v21  ;;  %v4501_v20 = vld [vmem:[#allocation5 + $0x804] ss:$16 sps:$4 sm:$0xff]   ;;  %v4499_v21 = vld [vmem:[#allocation5 + $0x800] ss:$16 sps:$4 sm:$0xff]  }
 0x1dd   :  { %1515 = vmatprep.subr.bf16.mxu1 %v4429_v22  ;;  %1556 = vmatprep.subr.bf16.mxu0 %v4432_v23  ;;  %v4553_v22 = vld [vmem:[#allocation5 + $0x860] ss:$16 sps:$4 sm:$0xff]   ;;  %v4555_v23 = vld [vmem:[#allocation5 + $0x864] ss:$16 sps:$4 sm:$0xff]  }
 0x1e0   :  { %1516 = vmatpush2.bf16.msra.mxu1 %v4427_v24  ;;  %1557 = vmatpush2.bf16.msra.mxu0 %v4430_v25  ;;  %v4504_v24 = vld [vmem:[#allocation5 + $0x7e4] ss:$16 sps:$4 sm:$0xff]   ;;  %v4502_v25 = vld [vmem:[#allocation5 + $0x7e0] ss:$16 sps:$4 sm:$0xff]  }
 0x1e1   :  { %1517 = vmatprep.subr.bf16.mxu1 %v4435_v26  ;;  %1558 = vmatprep.subr.bf16.mxu0 %v4438_v28  ;;  %v4559_v26 = vld [vmem:[#allocation5 + $0x840] ss:$16 sps:$4 sm:$0xff]   ;;  %v4561_v28 = vld [vmem:[#allocation5 + $0x844] ss:$16 sps:$4 sm:$0xff]  }
 0x1e4   :  { %1518 = vmatpush2.bf16.msra.mxu1 %v4433_v30  ;;  %1559 = vmatpush2.bf16.msra.mxu0 %v4436_v31  ;;  %v4507_v30 = vld [vmem:[#allocation5 + $0x7c4] ss:$16 sps:$4 sm:$0xff]   ;;  %v4505_v31 = vld [vmem:[#allocation5 + $0x7c0] ss:$16 sps:$4 sm:$0xff]  }
 0x1e5   :  { %1519 = vmatprep.subr.bf16.mxu1 %v4441_v32  ;;  %1560 = vmatprep.subr.bf16.mxu0 %v4444_v33  ;;  %v4565_v32 = vld [vmem:[#allocation5 + $0x820] ss:$16 sps:$4 sm:$0xff]   ;;  %v4567_v33 = vld [vmem:[#allocation5 + $0x824] ss:$16 sps:$4 sm:$0xff]  }
 0x1e8   :  { %1520 = vmatpush2.bf16.msra.mxu1 %v4439_v34  ;;  %1561 = vmatpush2.bf16.msra.mxu0 %v4442_v35  ;;  %v4510_v34 = vld [vmem:[#allocation5 + $0x7a4] ss:$16 sps:$4 sm:$0xff]   ;;  %v4508_v35 = vld [vmem:[#allocation5 + $0x7a0] ss:$16 sps:$4 sm:$0xff]  }
 0x1e9   :  { %1521 = vmatprep.subr.bf16.mxu1 %v4447_v36  ;;  %1562 = vmatprep.subr.bf16.mxu0 %v4450_v37  ;;  %v4571_v36 = vld [vmem:[#allocation5 + $0xa00] ss:$16 sps:$4 sm:$0xff]   ;;  %v4573_v37 = vld [vmem:[#allocation5 + $0xa04] ss:$16 sps:$4 sm:$0xff]  }
 0x1ec   :  { %1522 = vmatpush2.bf16.msra.mxu1 %v4445_v38  ;;  %1563 = vmatpush2.bf16.msra.mxu0 %v4448_v39  ;;  %v4513_v38 = vld [vmem:[#allocation5 + $0x784] ss:$16 sps:$4 sm:$0xff]   ;;  %v4511_v39 = vld [vmem:[#allocation5 + $0x780] ss:$16 sps:$4 sm:$0xff]  }
 0x1ed   :  { %1523 = vmatprep.subr.bf16.mxu1 %v4453_v40  ;;  %1564 = vmatprep.subr.bf16.mxu0 %v4456_v41  ;;  %v4577_v40 = vld [vmem:[#allocation5 + $0x9e0] ss:$16 sps:$4 sm:$0xff]   ;;  %v4579_v41 = vld [vmem:[#allocation5 + $0x9e4] ss:$16 sps:$4 sm:$0xff]  }
 0x1f0   :  { %1524 = vmatpush2.bf16.msra.mxu1 %v4451_v42  ;;  %1565 = vmatpush2.bf16.msra.mxu0 %v4454_v43  ;;  %v4516_v42 = vld [vmem:[#allocation5 + $0x764] ss:$16 sps:$4 sm:$0xff]   ;;  %v4514_v43 = vld [vmem:[#allocation5 + $0x760] ss:$16 sps:$4 sm:$0xff]  }
 0x1f1   :  { %1525 = vmatprep.subr.bf16.mxu1 %v4459_v10  ;;  %1566 = vmatprep.subr.bf16.mxu0 %v4462_v44  ;;  %v4583_v10 = vld [vmem:[#allocation5 + $0x9c0] ss:$16 sps:$4 sm:$0xff]   ;;  %v4585_v44 = vld [vmem:[#allocation5 + $0x9c4] ss:$16 sps:$4 sm:$0xff]  }
 0x1f4   :  { %1526 = vmatpush2.bf16.msra.mxu1 %v4457_v45  ;;  %1567 = vmatpush2.bf16.msra.mxu0 %v4460_v46  ;;  %v4519_v45 = vld [vmem:[#allocation5 + $0x744] ss:$16 sps:$4 sm:$0xff]   ;;  %v4517_v46 = vld [vmem:[#allocation5 + $0x740] ss:$16 sps:$4 sm:$0xff]  }
 0x1f5   :  { %1527 = vmatprep.subr.bf16.mxu1 %v4465_v47  ;;  %1568 = vmatprep.subr.bf16.mxu0 %v4468_v48  ;;  %v4589_v47 = vld [vmem:[#allocation5 + $0x9a0] ss:$16 sps:$4 sm:$0xff]   ;;  %v4591_v48 = vld [vmem:[#allocation5 + $0x9a4] ss:$16 sps:$4 sm:$0xff]  }
 0x1f8   :  { %1528 = vmatpush2.bf16.msra.mxu1 %v4463_v49  ;;  %1569 = vmatpush2.bf16.msra.mxu0 %v4466_v50  ;;  %v4522_v49 = vld [vmem:[#allocation5 + $0x724] ss:$16 sps:$4 sm:$0xff]   ;;  %v4520_v50 = vld [vmem:[#allocation5 + $0x720] ss:$16 sps:$4 sm:$0xff]  }
 0x1f9   :  { %1529 = vmatprep.subr.bf16.mxu1 %v4471_v51  ;;  %1570 = vmatprep.subr.bf16.mxu0 %v4474_v52  ;;  %v4595_v51 = vld [vmem:[#allocation5 + $0x980] ss:$16 sps:$4 sm:$0xff]   ;;  %v4597_v52 = vld [vmem:[#allocation5 + $0x984] ss:$16 sps:$4 sm:$0xff]  }
 0x1fc   :  { %1530 = vmatpush2.bf16.msra.mxu1 %v4469_v55  ;;  %1571 = vmatpush2.bf16.msra.mxu0 %v4472_v56  ;;  %v4528_v55 = vld [vmem:[#allocation5 + $0x70c] ss:$16 sps:$4 sm:$0xff]   ;;  %v4601_v56 = vld [vmem:[#allocation5 + $0x960] ss:$16 sps:$4 sm:$0xff]  }
 0x1fd   :  { %2380 = vmatprep.subr.bf16.mxu1 %v4477_v57  ;;  %2421 = vmatprep.subr.bf16.mxu0 %v4525_v2  ;;  %v4603_v57 = vld [vmem:[#allocation5 + $0x964] ss:$16 sps:$4 sm:$0xff]  }
 0x1ff   :  { %1532 = vmatmul.mubr.bf16.vlgmr.msra.gmra.mxu1 %v4985_v53  ;;  %1573 = vmatmul.mubr.bf16.vlgmr.msra.gmra.mxu0 %v4987_v54  ;;  %v4487_v53 = vld [vmem:[#allocation5 + $0x680] ss:$16 sps:$4 sm:$0xff]   ;;  %v4531_v54 = vld [vmem:[#allocation5 + $0x8e4] ss:$16 sps:$4 sm:$0xff]  }
 0x200   :  { %2381 = vmatpush1.bf16.msra.mxu1 %v4475_v58  ;;  %2422 = vmatpush1.bf16.msra.mxu0 %v4523_v1  ;;  %v4609_v58 = vld [vmem:[#allocation5 + $0x944] ss:$16 sps:$4 sm:$0xff]  }
 0x201   :  { %2382 = vmatprep.subr.bf16.mxu1 %v4480_v59  ;;  %2423 = vmatprep.subr.bf16.mxu0 %v4531_v54  ;;  %v4607_v59 = vld [vmem:[#allocation5 + $0x940] ss:$16 sps:$4 sm:$0xff]  }
 0x204   :  { %2383 = vmatpush1.bf16.msra.mxu1 %v4478_v60  ;;  %2424 = vmatpush1.bf16.msra.mxu0 %v4529_v4  ;;  %v4615_v60 = vld [vmem:[#allocation5 + $0x924] ss:$16 sps:$4 sm:$0xff]  }
 0x205   :  { %2384 = vmatprep.subr.bf16.mxu1 %v4483_v61  ;;  %2425 = vmatprep.subr.bf16.mxu0 %v4537_v8  ;;  %v4613_v61 = vld [vmem:[#allocation5 + $0x920] ss:$16 sps:$4 sm:$0xff]  }
 0x208   :  { %2385 = vmatpush1.bf16.msra.mxu1 %v4481_v62  ;;  %2426 = vmatpush1.bf16.msra.mxu0 %v4535_v7  ;;  %v4621_v62 = vld [vmem:[#allocation5 + $0x90c] ss:$16 sps:$4 sm:$0xff]  }
 0x209   :  { %2386 = vmatprep.subr.bf16.mxu1 %v4486_v63  ;;  %2427 = vmatprep.subr.bf16.mxu0 %v4543_v15  ;;  %v4993_v63 = vld [vmem:[#allocation7 + $0x2] ss:$8 sm:$0xf] }
 0x20a   :  { %v764_v1 = vrot.slane %v4993_v63, %v4971_v12 }
 0x20c   :  { %2387 = vmatpush1.bf16.msra.mxu1 %v4484_v0  ;;  %2428 = vmatpush1.bf16.msra.mxu0 %v4541_v14  ;;  %v760_v0 = vrot.slane %v4993_v63, %v4968_v11 }
 0x20d   :  { %2388 = vmatprep.subr.bf16.mxu1 %v4489_v3  ;;  %2429 = vmatprep.subr.bf16.mxu0 %v4549_v19 }
 0x210   :  { %2389 = vmatpush1.bf16.msra.mxu1 %v4487_v53  ;;  %2430 = vmatpush1.bf16.msra.mxu0 %v4547_v18  ;;  %v4526_v18 = vld [vmem:[#allocation5 + $0x708] ss:$16 sps:$4 sm:$0xff]  }
 0x211   :  { %2390 = vmatprep.subr.bf16.mxu1 %v4492_v5  ;;  %2431 = vmatprep.subr.bf16.mxu0 %v4555_v23  ;;  %v4538_v23 = vld [vmem:[#allocation5 + $0x6c8] ss:$16 sps:$4 sm:$0xff]  }
 0x214   :  { %2391 = vmatpush1.bf16.msra.mxu1 %v4490_v6  ;;  %2432 = vmatpush1.bf16.msra.mxu0 %v4553_v22  ;;  %v4540_v22 = vld [vmem:[#allocation5 + $0x6cc] ss:$16 sps:$4 sm:$0xff]  }
 0x215   :  { %2392 = vmatprep.subr.bf16.mxu1 %v4495_v9  ;;  %2433 = vmatprep.subr.bf16.mxu0 %v4561_v28  ;;  %v4550_v28 = vld [vmem:[#allocation5 + $0x688] ss:$16 sps:$4 sm:$0xff]  }
 0x218   :  { %2393 = vmatpush1.bf16.msra.mxu1 %v4493_v13  ;;  %2434 = vmatpush1.bf16.msra.mxu0 %v4559_v26  ;;  %v4552_v26 = vld [vmem:[#allocation5 + $0x68c] ss:$16 sps:$4 sm:$0xff]  }
 0x219   :  { %2394 = vmatprep.subr.bf16.mxu1 %v4498_v16  ;;  %2435 = vmatprep.subr.bf16.mxu0 %v4567_v33  ;;  %v4562_v33 = vld [vmem:[#allocation5 + $0x648] ss:$16 sps:$4 sm:$0xff]  }
 0x21c   :  { %2395 = vmatpush1.bf16.msra.mxu1 %v4496_v17  ;;  %2436 = vmatpush1.bf16.msra.mxu0 %v4565_v32  ;;  %v4564_v32 = vld [vmem:[#allocation5 + $0x64c] ss:$16 sps:$4 sm:$0xff]  }
 0x21d   :  { %2396 = vmatprep.subr.bf16.mxu1 %v4501_v20  ;;  %2437 = vmatprep.subr.bf16.mxu0 %v4573_v37  ;;  %v4534_v20 = vld [vmem:[#allocation5 + $0x6ec] ss:$16 sps:$4 sm:$0xff]   ;;  %v4574_v37 = vld [vmem:[#allocation5 + $0x808] ss:$16 sps:$4 sm:$0xff]  }
 0x220   :  { %2397 = vmatpush2.bf16.msra.mxu1 %v4499_v21  ;;  %2438 = vmatpush2.bf16.msra.mxu0 %v4571_v36  ;;  %v4532_v21 = vld [vmem:[#allocation5 + $0x6e8] ss:$16 sps:$4 sm:$0xff]   ;;  %v4576_v36 = vld [vmem:[#allocation5 + $0x80c] ss:$16 sps:$4 sm:$0xff]  }
 0x221   :  { %2398 = vmatprep.subr.bf16.mxu1 %v4504_v24  ;;  %2439 = vmatprep.subr.bf16.mxu0 %v4579_v41  ;;  %v4546_v24 = vld [vmem:[#allocation5 + $0x6ac] ss:$16 sps:$4 sm:$0xff]   ;;  %v4586_v41 = vld [vmem:[#allocation5 + $0x7c8] ss:$16 sps:$4 sm:$0xff]  }
 0x224   :  { %2399 = vmatpush2.bf16.msra.mxu1 %v4502_v25  ;;  %2440 = vmatpush2.bf16.msra.mxu0 %v4577_v40  ;;  %v4544_v25 = vld [vmem:[#allocation5 + $0x6a8] ss:$16 sps:$4 sm:$0xff]   ;;  %v4588_v40 = vld [vmem:[#allocation5 + $0x7cc] ss:$16 sps:$4 sm:$0xff]  }
 0x225   :  { %2400 = vmatprep.subr.bf16.mxu1 %v4507_v30  ;;  %2441 = vmatprep.subr.bf16.mxu0 %v4585_v44  ;;  %v4558_v30 = vld [vmem:[#allocation5 + $0x66c] ss:$16 sps:$4 sm:$0xff]   ;;  %v4598_v44 = vld [vmem:[#allocation5 + $0x788] ss:$16 sps:$4 sm:$0xff]  }
 0x228   :  { %2401 = vmatpush2.bf16.msra.mxu1 %v4505_v31  ;;  %2442 = vmatpush2.bf16.msra.mxu0 %v4583_v10  ;;  %v4556_v31 = vld [vmem:[#allocation5 + $0x668] ss:$16 sps:$4 sm:$0xff]   ;;  %v4600_v10 = vld [vmem:[#allocation5 + $0x78c] ss:$16 sps:$4 sm:$0xff]  }
 0x229   :  { %2402 = vmatprep.subr.bf16.mxu1 %v4510_v34  ;;  %2443 = vmatprep.subr.bf16.mxu0 %v4591_v48  ;;  %v4570_v34 = vld [vmem:[#allocation5 + $0x62c] ss:$16 sps:$4 sm:$0xff]  }
 0x22a   :  { %v4612_v48 = vld [vmem:[#allocation5 + $0x74c] ss:$16 sps:$4 sm:$0xff]  }
 0x22c   :  { %2403 = vmatpush2.bf16.msra.mxu1 %v4508_v35  ;;  %2444 = vmatpush2.bf16.msra.mxu0 %v4589_v47  ;;  %v4568_v35 = vld [vmem:[#allocation5 + $0x628] ss:$16 sps:$4 sm:$0xff]  }
 0x22d   :  { %2404 = vmatprep.subr.bf16.mxu1 %v4513_v38  ;;  %2445 = vmatprep.subr.bf16.mxu0 %v4597_v52  ;;  %v4582_v38 = vld [vmem:[#allocation5 + $0x7ec] ss:$16 sps:$4 sm:$0xff]   ;;  %v4604_v47 = vld [vmem:[#allocation5 + $0x768] ss:$16 sps:$4 sm:$0xff]  }
 0x230   :  { %2405 = vmatpush2.bf16.msra.mxu1 %v4511_v39  ;;  %2446 = vmatpush2.bf16.msra.mxu0 %v4595_v51  ;;  %v4580_v39 = vld [vmem:[#allocation5 + $0x7e8] ss:$16 sps:$4 sm:$0xff]  }
 0x231   :  { %2406 = vmatprep.subr.bf16.mxu1 %v4516_v42  ;;  %2447 = vmatprep.subr.bf16.mxu0 %v4603_v57  ;;  %v4594_v42 = vld [vmem:[#allocation5 + $0x7ac] ss:$16 sps:$4 sm:$0xff]  }
 0x234   :  { %2407 = vmatpush2.bf16.msra.mxu1 %v4514_v43  ;;  %2448 = vmatpush2.bf16.msra.mxu0 %v4601_v56  ;;  %v4592_v43 = vld [vmem:[#allocation5 + $0x7a8] ss:$16 sps:$4 sm:$0xff]  }
 0x235   :  { %2408 = vmatprep.subr.bf16.mxu1 %v4519_v45  ;;  %2449 = vmatprep.subr.bf16.mxu0 %v4609_v58  ;;  %v4606_v45 = vld [vmem:[#allocation5 + $0x76c] ss:$16 sps:$4 sm:$0xff]  }
 0x236   :  { %v4618_v58 = vld [vmem:[#allocation5 + $0x72c] ss:$16 sps:$4 sm:$0xff]  }
 0x238   :  { %2409 = vmatpush2.bf16.msra.mxu1 %v4517_v46  ;;  %2450 = vmatpush2.bf16.msra.mxu0 %v4607_v59  ;;  %v768_v46 = vrot.slane %v4993_v63, %v4976_v27 }
 0x239   :  { %2410 = vmatprep.subr.bf16.mxu1 %v4522_v49  ;;  %2451 = vmatprep.subr.bf16.mxu0 %v4615_v60  ;;  %v772_v49 = vrot.slane %v4993_v63, %v4979_v29 }
 0x23c   :  { %2411 = vmatpush2.bf16.msra.mxu1 %v4520_v50  ;;  %2452 = vmatpush2.bf16.msra.mxu0 %v4613_v61 }
 0x23d   :  { %2462 = vmatprep.subr.bf16.mxu1 %v4528_v55  ;;  %2503 = vmatprep.subr.bf16.mxu0 %v4621_v62  ;;  %v4610_v55 = vld [vmem:[#allocation5 + $0x748] ss:$16 sps:$4 sm:$0xff]  }
 0x27f   :  { %v1451_v2 = vpop.f32.mrf.mxu1  ;;  %v1492_v3 = vpop.f32.mrf.mxu0 }
 0x280   :  { %v1452_v53 = vadd.f32 %v1451_v2, %v760_v0 }
 0x281   :  { %v1453_v4 = vpop.f32.mrf.mxu1  ;;  %v1494_v54 = vpop.f32.mrf.mxu0 }
 0x282   :  { %v1493_v5 = vadd.f32 %v1492_v3, %v1452_v53  ;;  %v1454_v6 = vadd.f32 %v1453_v4, %v764_v1  ;;  %v4616_v1 = vld [vmem:[#allocation5 + $0x728] ss:$16 sps:$4 sm:$0xff]  }
 0x283   :  { %v1455_v7 = vpop.f32.mrf.mxu1  ;;  %v1496_v8 = vpop.f32.mrf.mxu0 }
 0x284   :  { %v1495_v9 = vadd.f32 %v1494_v54, %v1454_v6  ;;  %v1581_v13 = vmax.f32 %v1493_v5, 0.0  ;;  %v4619_v54 = vld [vmem:[#allocation5 + $0x908] ss:$16 sps:$4 sm:$0xff]   ;;  %v4624_v6 = vld [vmem:[#allocation5 + $0x8ec] ss:$16 sps:$4 sm:$0xff]  }
 0x285   :  { %v1456_v14 = vpop.f32.mrf.mxu1  ;;  %v1497_v15 = vpop.f32.mrf.mxu0  ;;  %v4622_v7 = vld [vmem:[#allocation5 + $0x8e8] ss:$16 sps:$4 sm:$0xff]   ;;  %v4627_v8 = vld [vmem:[#allocation5 + $0x8cc] ss:$16 sps:$4 sm:$0xff]  }
 0x286   :  { %v1582_v16 = vmax.f32 %v1495_v9, 0.0  ;;  %v4999_v19 = vpack.c.bf16 %v1581_v13, %v1581_v13  ;;  %v4625_v9 = vld [vmem:[#allocation5 + $0x8c8] ss:$16 sps:$4 sm:$0xff]   ;;  %v4630_v13 = vld [vmem:[#allocation5 + $0x8ac] ss:$16 sps:$4 sm:$0xff]  }
 0x287   :  { %v4667_v14 = vld [vmem:[#allocation5 + $0xb00] ss:$16 sps:$4 sm:$0xff]   ;;  %v4669_v15 = vld [vmem:[#allocation5 + $0xb04] ss:$16 sps:$4 sm:$0xff]  }
 0x288   :  { %v1716_v17 = vpack.c.bf16 %v1582_v16, %v1582_v16  ;;  %v4672_v16 = vld [vmem:[#allocation5 + $0xae4] ss:$16 sps:$4 sm:$0xff]  }
 0x28a   :  { %2412 = vmatprep.mubr.bf16.mxu1 %v1716_v17 }
 0x28b   :  { %2413 = vmatmul.mubr.bf16.vlgmr.msra.gmra.mxu1 %v4999_v19 }
 0x28c   :  { %2463 = vmatpush1.bf16.msra.mxu1 %v4526_v18  ;;  %2494 = vmatprep.mubr.bf16.mxu1 %v1716_v17  ;;  %v4628_v17 = vld [vmem:[#allocation5 + $0x8a8] ss:$16 sps:$4 sm:$0xff]   ;;  %v4670_v18 = vld [vmem:[#allocation5 + $0xae0] ss:$16 sps:$4 sm:$0xff]  }
 0x28d   :  { %2464 = vmatprep.subr.bf16.mxu1 %v4534_v20  ;;  %v4633_v20 = vld [vmem:[#allocation5 + $0x88c] ss:$16 sps:$4 sm:$0xff]  }
 0x290   :  { %2465 = vmatpush1.bf16.msra.mxu1 %v4532_v21  ;;  %v4631_v21 = vld [vmem:[#allocation5 + $0x888] ss:$16 sps:$4 sm:$0xff]  }
 0x291   :  { %2466 = vmatprep.subr.bf16.mxu1 %v4540_v22  ;;  %v4673_v22 = vld [vmem:[#allocation5 + $0xac0] ss:$16 sps:$4 sm:$0xff]  }
 0x294   :  { %2467 = vmatpush1.bf16.msra.mxu1 %v4538_v23  ;;  %v4636_v23 = vld [vmem:[#allocation5 + $0x86c] ss:$16 sps:$4 sm:$0xff]  }
 0x295   :  { %2468 = vmatprep.subr.bf16.mxu1 %v4546_v24  ;;  %v4678_v24 = vld [vmem:[#allocation5 + $0xaa4] ss:$16 sps:$4 sm:$0xff]  }
 0x298   :  { %2469 = vmatpush1.bf16.msra.mxu1 %v4544_v25  ;;  %v4634_v25 = vld [vmem:[#allocation5 + $0x868] ss:$16 sps:$4 sm:$0xff]  }
 0x299   :  { %2470 = vmatprep.subr.bf16.mxu1 %v4552_v26  ;;  %v4676_v26 = vld [vmem:[#allocation5 + $0xaa0] ss:$16 sps:$4 sm:$0xff]  }
 0x29c   :  { %2471 = vmatpush1.bf16.msra.mxu1 %v4550_v28  ;;  %v4639_v28 = vld [vmem:[#allocation5 + $0x84c] ss:$16 sps:$4 sm:$0xff]  }
 0x29d   :  { %2472 = vmatprep.subr.bf16.mxu1 %v4558_v30  ;;  %v4681_v30 = vld [vmem:[#allocation5 + $0xa84] ss:$16 sps:$4 sm:$0xff]  }
 0x2a0   :  { %2473 = vmatpush1.bf16.msra.mxu1 %v4556_v31  ;;  %v4637_v31 = vld [vmem:[#allocation5 + $0x848] ss:$16 sps:$4 sm:$0xff]  }
 0x2a1   :  { %2474 = vmatprep.subr.bf16.mxu1 %v4564_v32  ;;  %v4679_v32 = vld [vmem:[#allocation5 + $0xa80] ss:$16 sps:$4 sm:$0xff]  }
 0x2a4   :  { %2475 = vmatpush1.bf16.msra.mxu1 %v4562_v33  ;;  %v4642_v33 = vld [vmem:[#allocation5 + $0x82c] ss:$16 sps:$4 sm:$0xff]  }
 0x2a5   :  { %2476 = vmatprep.subr.bf16.mxu1 %v4570_v34  ;;  %v4684_v34 = vld [vmem:[#allocation5 + $0xa64] ss:$16 sps:$4 sm:$0xff]  }
 0x2a8   :  { %2477 = vmatpush1.bf16.msra.mxu1 %v4568_v35  ;;  %v4640_v35 = vld [vmem:[#allocation5 + $0x828] ss:$16 sps:$4 sm:$0xff]  }
 0x2a9   :  { %2478 = vmatprep.subr.bf16.mxu1 %v4576_v36  ;;  %v4682_v36 = vld [vmem:[#allocation5 + $0xa60] ss:$16 sps:$4 sm:$0xff]  }
 0x2ac   :  { %2479 = vmatpush2.bf16.msra.mxu1 %v4574_v37  ;;  %v4645_v37 = vld [vmem:[#allocation5 + $0xa0c] ss:$16 sps:$4 sm:$0xff]  }
 0x2ad   :  { %2480 = vmatprep.subr.bf16.mxu1 %v4582_v38  ;;  %v4687_v38 = vld [vmem:[#allocation5 + $0xa44] ss:$16 sps:$4 sm:$0xff]  }
 0x2b0   :  { %2481 = vmatpush2.bf16.msra.mxu1 %v4580_v39  ;;  %v4643_v39 = vld [vmem:[#allocation5 + $0xa08] ss:$16 sps:$4 sm:$0xff]  }
 0x2b1   :  { %2482 = vmatprep.subr.bf16.mxu1 %v4588_v40  ;;  %v4685_v40 = vld [vmem:[#allocation5 + $0xa40] ss:$16 sps:$4 sm:$0xff]  }
 0x2b4   :  { %2483 = vmatpush2.bf16.msra.mxu1 %v4586_v41  ;;  %v4648_v41 = vld [vmem:[#allocation5 + $0x9ec] ss:$16 sps:$4 sm:$0xff]  }
 0x2b5   :  { %2484 = vmatprep.subr.bf16.mxu1 %v4594_v42  ;;  %v4690_v42 = vld [vmem:[#allocation5 + $0xa24] ss:$16 sps:$4 sm:$0xff]  }
 0x2b8   :  { %2485 = vmatpush2.bf16.msra.mxu1 %v4592_v43  ;;  %v4646_v43 = vld [vmem:[#allocation5 + $0x9e8] ss:$16 sps:$4 sm:$0xff]  }
 0x2b9   :  { %2486 = vmatprep.subr.bf16.mxu1 %v4600_v10  ;;  %v4688_v10 = vld [vmem:[#allocation5 + $0xa20] ss:$16 sps:$4 sm:$0xff]  }
 0x2bc   :  { %2487 = vmatpush2.bf16.msra.mxu1 %v4598_v44  ;;  %v4651_v44 = vld [vmem:[#allocation5 + $0x9cc] ss:$16 sps:$4 sm:$0xff]  }
 0x2bd   :  { %2488 = vmatprep.subr.bf16.mxu1 %v4606_v45  ;;  %v4693_v45 = vld [vmem:[#allocation5 + $0xc04] ss:$16 sps:$4 sm:$0xff]  }
 0x2bf   :  { %v1533_v50 = vpop.f32.mrf.mxu1  ;;  %v1574_v51 = vpop.f32.mrf.mxu0 }
 0x2c0   :  { %v1534_v52 = vadd.f32 %v1533_v50, %v768_v46  ;;  %2489 = vmatpush2.bf16.msra.mxu1 %v4604_v47  ;;  %v4649_v46 = vld [vmem:[#allocation5 + $0x9c8] ss:$16 sps:$4 sm:$0xff]   ;;  %v4691_v47 = vld [vmem:[#allocation5 + $0xc00] ss:$16 sps:$4 sm:$0xff]  }
 0x2c1   :  { %v1535_v56 = vpop.f32.mrf.mxu1  ;;  %v1576_v57 = vpop.f32.mrf.mxu0  ;;  %2490 = vmatprep.subr.bf16.mxu1 %v4612_v48  ;;  %v4654_v48 = vld [vmem:[#allocation5 + $0x9ac] ss:$16 sps:$4 sm:$0xff]   ;;  %v4652_v50 = vld [vmem:[#allocation5 + $0x9a8] ss:$16 sps:$4 sm:$0xff]  }
 0x2c2   :  { %v1575_v59 = vadd.f32 %v1574_v51, %v1534_v52  ;;  %v1536_v60 = vadd.f32 %v1535_v56, %v772_v49  ;;  %v4696_v49 = vld [vmem:[#allocation5 + $0xbe4] ss:$16 sps:$4 sm:$0xff]   ;;  %v4694_v51 = vld [vmem:[#allocation5 + $0xbe0] ss:$16 sps:$4 sm:$0xff]   ;;  %v4657_v52 = vld [vmem:[#allocation5 + $0x98c] ss:$16 sps:$4 sm:$0xff]  }
 0x2c3   :  { %v1537_v61 = vpop.f32.mrf.mxu1  ;;  %v1578_v62 = vpop.f32.mrf.mxu0  ;;  %v4655_v56 = vld [vmem:[#allocation5 + $0x988] ss:$16 sps:$4 sm:$0xff]  }
 0x2c4   :  { %v1577_v0 = vadd.f32 %v1576_v57, %v1536_v60  ;;  %2491 = vmatpush2.bf16.msra.mxu1 %v4610_v55  ;;  %v1583_v2 = vmax.f32 %v1575_v59, 0.0  ;;  %v4699_v55 = vld [vmem:[#allocation5 + $0xbc4] ss:$16 sps:$4 sm:$0xff]   ;;  %v4697_v57 = vld [vmem:[#allocation5 + $0xbc0] ss:$16 sps:$4 sm:$0xff]  }
 0x2c5   :  { %v1538_v3 = vpop.f32.mrf.mxu1  ;;  %v1579_v53 = vpop.f32.mrf.mxu0  ;;  %2492 = vmatprep.subr.bf16.mxu1 %v4618_v58  ;;  %v4660_v58 = vld [vmem:[#allocation5 + $0x96c] ss:$16 sps:$4 sm:$0xff]   ;;  %v4702_v59 = vld [vmem:[#allocation5 + $0xba4] ss:$16 sps:$4 sm:$0xff]   ;;  %v4658_v60 = vld [vmem:[#allocation5 + $0x968] ss:$16 sps:$4 sm:$0xff]  }
 0x2c6   :  { %v1584_v63 = vmax.f32 %v1577_v0, 0.0  ;;  %v5006_v5 = vpack.c.bf16 %v1583_v2, %v1583_v2  ;;  %v4700_v61 = vld [vmem:[#allocation5 + $0xba0] ss:$16 sps:$4 sm:$0xff]   ;;  %v4663_v62 = vld [vmem:[#allocation5 + $0x94c] ss:$16 sps:$4 sm:$0xff]  }
 0x2c7   :  { %v4705_v0 = vld [vmem:[#allocation5 + $0xb84] ss:$16 sps:$4 sm:$0xff]   ;;  %v4703_v2 = vld [vmem:[#allocation5 + $0xb80] ss:$16 sps:$4 sm:$0xff]   ;;  %v4666_v3 = vld [vmem:[#allocation5 + $0x92c] ss:$16 sps:$4 sm:$0xff]  }
 0x2c8   :  { %v1718_v4 = vpack.c.bf16 %v1584_v63, %v1584_v63  ;;  %2493 = vmatpush2.bf16.msra.mxu1 %v4616_v1  ;;  %v4661_v1 = vld [vmem:[#allocation5 + $0x948] ss:$16 sps:$4 sm:$0xff]   ;;  %v4708_v53 = vld [vmem:[#allocation5 + $0xb64] ss:$16 sps:$4 sm:$0xff]  }
 0x2c9   :  { %2949 = vmatprep.subr.bf16.mxu1 %v4669_v15  ;;  %v4664_v63 = vld [vmem:[#allocation5 + $0x928] ss:$16 sps:$4 sm:$0xff]   ;;  %v4718_v15 = vld [vmem:[#allocation5 + $0xce0] ss:$16 sps:$4 sm:$0xff]  }
 0x2ca   :  { %2453 = vmatprep.mubr.bf16.mxu0 %v1718_v4 }
 0x2cb   :  { %2454 = vmatmul.mubr.bf16.vlgmr.msra.gmra.mxu0 %v5006_v5  ;;  %2495 = vmatmul.mubr.bf16.vlgmr.msra.gmra.mxu1 %v4999_v19  ;;  %v4675_v19 = vld [vmem:[#allocation5 + $0xac4] ss:$16 sps:$4 sm:$0xff]  }
 0x2cc   :  { %2504 = vmatpush1.bf16.msra.mxu0 %v4619_v54  ;;  %2535 = vmatprep.mubr.bf16.mxu0 %v1718_v4  ;;  %v4706_v4 = vld [vmem:[#allocation5 + $0xb60] ss:$16 sps:$4 sm:$0xff]   ;;  %v4711_v54 = vld [vmem:[#allocation5 + $0xb44] ss:$16 sps:$4 sm:$0xff]  }
 0x2cd   :  { %2505 = vmatprep.subr.bf16.mxu0 %v4624_v6  ;;  %2950 = vmatpush1.bf16.msra.mxu1 %v4667_v14  ;;  %v4709_v6 = vld [vmem:[#allocation5 + $0xb40] ss:$16 sps:$4 sm:$0xff]   ;;  %v4720_v14 = vld [vmem:[#allocation5 + $0xce4] ss:$16 sps:$4 sm:$0xff]  }
 0x2ce   :  { %2951 = vmatprep.subr.bf16.mxu1 %v4672_v16  ;;  %v4723_v16 = vld [vmem:[#allocation5 + $0xcc4] ss:$16 sps:$4 sm:$0xff]  }
 0x2d0   :  { %2506 = vmatpush1.bf16.msra.mxu0 %v4622_v7  ;;  %v4714_v7 = vld [vmem:[#allocation5 + $0xb24] ss:$16 sps:$4 sm:$0xff]  }
 0x2d1   :  { %2507 = vmatprep.subr.bf16.mxu0 %v4627_v8  ;;  %2952 = vmatpush1.bf16.msra.mxu1 %v4670_v18  ;;  %v4712_v8 = vld [vmem:[#allocation5 + $0xb20] ss:$16 sps:$4 sm:$0xff]  }
 0x2d2   :  { %2953 = vmatprep.subr.bf16.mxu1 %v4675_v19  ;;  %v4724_v18 = vld [vmem:[#allocation5 + $0xca0] ss:$16 sps:$4 sm:$0xff]  }
 0x2d3   :  { %v4727_v19 = vld [vmem:[#allocation5 + $0xc80] ss:$16 sps:$4 sm:$0xff]  }
 0x2d4   :  { %2508 = vmatpush1.bf16.msra.mxu0 %v4625_v9  ;;  %v4717_v9 = vld [vmem:[#allocation5 + $0xd04] ss:$16 sps:$4 sm:$0xff]  }
 0x2d5   :  { %2509 = vmatprep.subr.bf16.mxu0 %v4630_v13  ;;  %2954 = vmatpush1.bf16.msra.mxu1 %v4673_v22  ;;  %v4715_v13 = vld [vmem:[#allocation5 + $0xd00] ss:$16 sps:$4 sm:$0xff]  }
 0x2d6   :  { %2955 = vmatprep.subr.bf16.mxu1 %v4678_v24  ;;  %v4730_v22 = vld [vmem:[#allocation5 + $0xc60] ss:$16 sps:$4 sm:$0xff]  }
 0x2d7   :  { %v4733_v24 = vld [vmem:[#allocation5 + $0xc40] ss:$16 sps:$4 sm:$0xff]  }
 0x2d8   :  { %2510 = vmatpush1.bf16.msra.mxu0 %v4628_v17  ;;  %v4721_v17 = vld [vmem:[#allocation5 + $0xcc0] ss:$16 sps:$4 sm:$0xff]  }
 0x2d9   :  { %2511 = vmatprep.subr.bf16.mxu0 %v4633_v20  ;;  %2956 = vmatpush1.bf16.msra.mxu1 %v4676_v26  ;;  %v4729_v20 = vld [vmem:[#allocation5 + $0xc84] ss:$16 sps:$4 sm:$0xff]   ;;  %v4736_v26 = vld [vmem:[#allocation5 + $0xc20] ss:$16 sps:$4 sm:$0xff]  }
 0x2da   :  { %2957 = vmatprep.subr.bf16.mxu1 %v4681_v30  ;;  %v4739_v30 = vld [vmem:[#allocation5 + $0xe00] ss:$16 sps:$4 sm:$0xff]  }
 0x2dc   :  { %2512 = vmatpush1.bf16.msra.mxu0 %v4631_v21  ;;  %v4732_v21 = vld [vmem:[#allocation5 + $0xc64] ss:$16 sps:$4 sm:$0xff]  }
 0x2dd   :  { %2513 = vmatprep.subr.bf16.mxu0 %v4636_v23  ;;  %2958 = vmatpush1.bf16.msra.mxu1 %v4679_v32  ;;  %v4735_v23 = vld [vmem:[#allocation5 + $0xc44] ss:$16 sps:$4 sm:$0xff]   ;;  %v4742_v32 = vld [vmem:[#allocation5 + $0xde0] ss:$16 sps:$4 sm:$0xff]  }
 0x2de   :  { %2959 = vmatprep.subr.bf16.mxu1 %v4684_v34  ;;  %v4745_v34 = vld [vmem:[#allocation5 + $0xdc0] ss:$16 sps:$4 sm:$0xff]  }
 0x2e0   :  { %2514 = vmatpush1.bf16.msra.mxu0 %v4634_v25  ;;  %v4738_v25 = vld [vmem:[#allocation5 + $0xc24] ss:$16 sps:$4 sm:$0xff]  }
 0x2e1   :  { %2515 = vmatprep.subr.bf16.mxu0 %v4639_v28  ;;  %2960 = vmatpush1.bf16.msra.mxu1 %v4682_v36  ;;  %v4741_v28 = vld [vmem:[#allocation5 + $0xe04] ss:$16 sps:$4 sm:$0xff]   ;;  %v4748_v36 = vld [vmem:[#allocation5 + $0xda0] ss:$16 sps:$4 sm:$0xff]  }
 0x2e2   :  { %2961 = vmatprep.subr.bf16.mxu1 %v4687_v38  ;;  %v4751_v38 = vld [vmem:[#allocation5 + $0xd80] ss:$16 sps:$4 sm:$0xff]  }
 0x2e4   :  { %2516 = vmatpush1.bf16.msra.mxu0 %v4637_v31  ;;  %v4744_v31 = vld [vmem:[#allocation5 + $0xde4] ss:$16 sps:$4 sm:$0xff]  }
 0x2e5   :  { %2517 = vmatprep.subr.bf16.mxu0 %v4642_v33  ;;  %2962 = vmatpush1.bf16.msra.mxu1 %v4685_v40  ;;  %v4747_v33 = vld [vmem:[#allocation5 + $0xdc4] ss:$16 sps:$4 sm:$0xff]   ;;  %v4754_v40 = vld [vmem:[#allocation5 + $0xd60] ss:$16 sps:$4 sm:$0xff]  }
 0x2e6   :  { %2963 = vmatprep.subr.bf16.mxu1 %v4690_v42  ;;  %v4759_v42 = vld [vmem:[#allocation5 + $0xd44] ss:$16 sps:$4 sm:$0xff]  }
 0x2e8   :  { %2518 = vmatpush1.bf16.msra.mxu0 %v4640_v35  ;;  %v4750_v35 = vld [vmem:[#allocation5 + $0xda4] ss:$16 sps:$4 sm:$0xff]  }
 0x2e9   :  { %2519 = vmatprep.subr.bf16.mxu0 %v4645_v37  ;;  %2964 = vmatpush1.bf16.msra.mxu1 %v4688_v10  ;;  %v4753_v37 = vld [vmem:[#allocation5 + $0xd84] ss:$16 sps:$4 sm:$0xff]  }
 0x2ea   :  { %2965 = vmatprep.subr.bf16.mxu1 %v4693_v45  ;;  %v4762_v45 = vld [vmem:[#allocation5 + $0xd24] ss:$16 sps:$4 sm:$0xff]  }
 0x2ec   :  { %2520 = vmatpush2.bf16.msra.mxu0 %v4643_v39  ;;  %v4756_v39 = vld [vmem:[#allocation5 + $0xd64] ss:$16 sps:$4 sm:$0xff]  }
 0x2ed   :  { %2521 = vmatprep.subr.bf16.mxu0 %v4648_v41  ;;  %2966 = vmatpush2.bf16.msra.mxu1 %v4691_v47 }
 0x2ee   :  { %2967 = vmatprep.subr.bf16.mxu1 %v4696_v49 }
 0x2f0   :  { %2522 = vmatpush2.bf16.msra.mxu0 %v4646_v43  ;;  %v4757_v43 = vld [vmem:[#allocation5 + $0xd40] ss:$16 sps:$4 sm:$0xff]  }
 0x2f1   :  { %2523 = vmatprep.subr.bf16.mxu0 %v4651_v44  ;;  %2968 = vmatpush2.bf16.msra.mxu1 %v4694_v51 }
 0x2f2   :  { %2969 = vmatprep.subr.bf16.mxu1 %v4699_v55 }
 0x2f4   :  { %2524 = vmatpush2.bf16.msra.mxu0 %v4649_v46  ;;  %v4760_v46 = vld [vmem:[#allocation5 + $0xd20] ss:$16 sps:$4 sm:$0xff]  }
 0x2f5   :  { %2525 = vmatprep.subr.bf16.mxu0 %v4654_v48  ;;  %2970 = vmatpush2.bf16.msra.mxu1 %v4697_v57  ;;  %v1714_v48 = vld [vmem:[#allocation7 + $0x3] ss:$8 sm:$0xf] }
 0x2f6   :  { %2971 = vmatprep.subr.bf16.mxu1 %v4702_v59  ;;  %v1723_v49 = vrot.slane %v1714_v48, %v4968_v11 }
 0x2f8   :  { %2526 = vmatpush2.bf16.msra.mxu0 %v4652_v50  ;;  %v1727_v50 = vrot.slane %v1714_v48, %v4971_v12 }
 0x2f9   :  { %2527 = vmatprep.subr.bf16.mxu0 %v4657_v52  ;;  %2972 = vmatpush2.bf16.msra.mxu1 %v4700_v61 }
 0x2fa   :  { %2973 = vmatprep.subr.bf16.mxu1 %v4705_v0 }
 0x2fc   :  { %2528 = vmatpush2.bf16.msra.mxu0 %v4655_v56 }
 0x2fd   :  { %2529 = vmatprep.subr.bf16.mxu0 %v4660_v58  ;;  %2974 = vmatpush2.bf16.msra.mxu1 %v4703_v2 }
 0x2fe   :  { %2975 = vmatprep.subr.bf16.mxu1 %v4708_v53 }
 0x300   :  { %2530 = vmatpush2.bf16.msra.mxu0 %v4658_v60 }
 0x301   :  { %2531 = vmatprep.subr.bf16.mxu0 %v4663_v62  ;;  %2976 = vmatpush2.bf16.msra.mxu1 %v4706_v4  ;;  %v1731_v4 = vrot.slane %v1714_v48, %v4976_v27  ;;  %v4766_v27 = vld [vmem:[#allocation5 + $0xee0] ss:$16 sps:$4 sm:$0xff]  }
 0x302   :  { %2977 = vmatprep.subr.bf16.mxu1 %v4711_v54  ;;  %v1735_v54 = vrot.slane %v1714_v48, %v4979_v29  ;;  %v4771_v29 = vld [vmem:[#allocation5 + $0xec4] ss:$16 sps:$4 sm:$0xff]   ;;  %v4805_v48 = vld [vmem:[#allocation5 + $0xf40] ss:$16 sps:$4 sm:$0xff]  }
 0x304   :  { %2532 = vmatpush2.bf16.msra.mxu0 %v4661_v1 }
 0x305   :  { %2533 = vmatprep.subr.bf16.mxu0 %v4666_v3  ;;  %2978 = vmatpush2.bf16.msra.mxu1 %v4709_v6 }
 0x306   :  { %2979 = vmatprep.subr.bf16.mxu1 %v4714_v7 }
 0x308   :  { %2534 = vmatpush2.bf16.msra.mxu0 %v4664_v63 }
 0x309   :  { %2980 = vmatpush2.bf16.msra.mxu1 %v4712_v8  ;;  %2990 = vmatprep.subr.bf16.mxu0 %v4717_v9 }
 0x30b   :  { %2536 = vmatmul.mubr.bf16.vlgmr.msra.gmra.mxu0 %v5006_v5  ;;  %v4726_v5 = vld [vmem:[#allocation5 + $0xca4] ss:$16 sps:$4 sm:$0xff]  }
 0x30c   :  { %2991 = vmatpush1.bf16.msra.mxu0 %v4715_v13 }
 0x30d   :  { %2992 = vmatprep.subr.bf16.mxu0 %v4720_v14 }
 0x310   :  { %2993 = vmatpush1.bf16.msra.mxu0 %v4718_v15 }
 0x311   :  { %2994 = vmatprep.subr.bf16.mxu0 %v4723_v16 }
 0x314   :  { %2995 = vmatpush1.bf16.msra.mxu0 %v4721_v17 }
 0x315   :  { %2996 = vmatprep.subr.bf16.mxu0 %v4726_v5 }
 0x318   :  { %2997 = vmatpush1.bf16.msra.mxu0 %v4724_v18 }
 0x319   :  { %2998 = vmatprep.subr.bf16.mxu0 %v4729_v20 }
 0x31c   :  { %2999 = vmatpush1.bf16.msra.mxu0 %v4727_v19  ;;  %v4763_v19 = vld [vmem:[#allocation5 + $0xf00] ss:$16 sps:$4 sm:$0xff]  }
 0x31d   :  { %3000 = vmatprep.subr.bf16.mxu0 %v4732_v21  ;;  %v4765_v21 = vld [vmem:[#allocation5 + $0xf04] ss:$16 sps:$4 sm:$0xff]  }
 0x31e   :  { %3240 = vmatprep.subr.bf16.mxu1 %v4765_v21  ;;  %v4823_v21 = vld [vmem:[#allocation5 + $0x1140] ss:$16 sps:$4 sm:$0xff]  }
 0x320   :  { %3001 = vmatpush1.bf16.msra.mxu0 %v4730_v22  ;;  %v4768_v22 = vld [vmem:[#allocation5 + $0xee4] ss:$16 sps:$4 sm:$0xff]  }
 0x321   :  { %3002 = vmatprep.subr.bf16.mxu0 %v4735_v23  ;;  %v4769_v23 = vld [vmem:[#allocation5 + $0xec0] ss:$16 sps:$4 sm:$0xff]  }
 0x324   :  { %3003 = vmatpush1.bf16.msra.mxu0 %v4733_v24  ;;  %v4774_v24 = vld [vmem:[#allocation5 + $0xea4] ss:$16 sps:$4 sm:$0xff]  }
 0x325   :  { %3004 = vmatprep.subr.bf16.mxu0 %v4738_v25  ;;  %v4772_v25 = vld [vmem:[#allocation5 + $0xea0] ss:$16 sps:$4 sm:$0xff]  }
 0x328   :  { %3005 = vmatpush1.bf16.msra.mxu0 %v4736_v26  ;;  %v4777_v26 = vld [vmem:[#allocation5 + $0xe84] ss:$16 sps:$4 sm:$0xff]  }
 0x329   :  { %3006 = vmatprep.subr.bf16.mxu0 %v4741_v28  ;;  %v4775_v28 = vld [vmem:[#allocation5 + $0xe80] ss:$16 sps:$4 sm:$0xff]  }
 0x32c   :  { %3007 = vmatpush2.bf16.msra.mxu0 %v4739_v30  ;;  %v4780_v30 = vld [vmem:[#allocation5 + $0xe64] ss:$16 sps:$4 sm:$0xff]  }
 0x32d   :  { %3008 = vmatprep.subr.bf16.mxu0 %v4744_v31  ;;  %v4778_v31 = vld [vmem:[#allocation5 + $0xe60] ss:$16 sps:$4 sm:$0xff]  }
 0x330   :  { %3009 = vmatpush2.bf16.msra.mxu0 %v4742_v32  ;;  %v4783_v32 = vld [vmem:[#allocation5 + $0xe44] ss:$16 sps:$4 sm:$0xff]  }
 0x331   :  { %3010 = vmatprep.subr.bf16.mxu0 %v4747_v33  ;;  %v4781_v33 = vld [vmem:[#allocation5 + $0xe40] ss:$16 sps:$4 sm:$0xff]  }
 0x334   :  { %3011 = vmatpush2.bf16.msra.mxu0 %v4745_v34  ;;  %v4786_v34 = vld [vmem:[#allocation5 + $0xe24] ss:$16 sps:$4 sm:$0xff]  }
 0x335   :  { %3012 = vmatprep.subr.bf16.mxu0 %v4750_v35  ;;  %v4784_v35 = vld [vmem:[#allocation5 + $0xe20] ss:$16 sps:$4 sm:$0xff]  }
 0x338   :  { %3013 = vmatpush2.bf16.msra.mxu0 %v4748_v36  ;;  %v4789_v36 = vld [vmem:[#allocation5 + $0x1004] ss:$16 sps:$4 sm:$0xff]  }
 0x339   :  { %3014 = vmatprep.subr.bf16.mxu0 %v4753_v37  ;;  %v4787_v37 = vld [vmem:[#allocation5 + $0x1000] ss:$16 sps:$4 sm:$0xff]  }
 0x33c   :  { %3015 = vmatpush2.bf16.msra.mxu0 %v4751_v38  ;;  %v4792_v38 = vld [vmem:[#allocation5 + $0xfe4] ss:$16 sps:$4 sm:$0xff]  }
 0x33d   :  { %3016 = vmatprep.subr.bf16.mxu0 %v4756_v39  ;;  %v4790_v39 = vld [vmem:[#allocation5 + $0xfe0] ss:$16 sps:$4 sm:$0xff]  }
 0x340   :  { %3017 = vmatpush2.bf16.msra.mxu0 %v4754_v40  ;;  %v4795_v40 = vld [vmem:[#allocation5 + $0xfc4] ss:$16 sps:$4 sm:$0xff]  }
 0x341   :  { %3018 = vmatprep.subr.bf16.mxu0 %v4759_v42  ;;  %v4798_v42 = vld [vmem:[#allocation5 + $0xfa4] ss:$16 sps:$4 sm:$0xff]  }
 0x344   :  { %3019 = vmatpush2.bf16.msra.mxu0 %v4757_v43  ;;  %v4796_v43 = vld [vmem:[#allocation5 + $0xfa0] ss:$16 sps:$4 sm:$0xff]  }
 0x345   :  { %3020 = vmatprep.subr.bf16.mxu0 %v4762_v45  ;;  %v4804_v45 = vld [vmem:[#allocation5 + $0xf64] ss:$16 sps:$4 sm:$0xff]  }
 0x348   :  { %3021 = vmatpush2.bf16.msra.mxu0 %v4760_v46  ;;  %v4802_v46 = vld [vmem:[#allocation5 + $0xf60] ss:$16 sps:$4 sm:$0xff]  }
 0x34b   :  { %v2414_v41 = vpop.f32.mrf.mxu1 }
 0x34c   :  { %v2415_v51 = vadd.f32 %v2414_v41, %v1723_v49  ;;  %v4793_v41 = vld [vmem:[#allocation5 + $0xfc0] ss:$16 sps:$4 sm:$0xff]   ;;  %v4810_v49 = vld [vmem:[#allocation5 + $0xf24] ss:$16 sps:$4 sm:$0xff]  }
 0x34d   :  { %v2416_v10 = vpop.f32.mrf.mxu1 }
 0x34e   :  { %v2417_v56 = vadd.f32 %v2416_v10, %v1727_v50  ;;  %v4801_v10 = vld [vmem:[#allocation5 + $0xf84] ss:$16 sps:$4 sm:$0xff]   ;;  %v4808_v50 = vld [vmem:[#allocation5 + $0xf20] ss:$16 sps:$4 sm:$0xff]  }
 0x34f   :  { %v2418_v44 = vpop.f32.mrf.mxu1 }
 0x350   :  { %v4799_v44 = vld [vmem:[#allocation5 + $0xf80] ss:$16 sps:$4 sm:$0xff]  }
 0x351   :  { %v2419_v47 = vpop.f32.mrf.mxu1 }
 0x352   :  { %v4807_v47 = vld [vmem:[#allocation5 + $0xf44] ss:$16 sps:$4 sm:$0xff]  }
 0x38b   :  { %v2455_v52 = vpop.f32.mrf.mxu0  ;;  %v2496_v55 = vpop.f32.mrf.mxu1 }
 0x38c   :  { %v2456_v57 = vadd.f32 %v2455_v52, %v2415_v51  ;;  %v2497_v6 = vadd.f32 %v2496_v55, %v1731_v4  ;;  %v4811_v51 = vld [vmem:[#allocation5 + $0x1200] ss:$16 sps:$4 sm:$0xff]   ;;  %v2613_v4 = vld [vmem:[#allocation7 + $0x4] ss:$8 sm:$0x3] }
 0x38d   :  { %v2457_v58 = vpop.f32.mrf.mxu0  ;;  %v2498_v59 = vpop.f32.mrf.mxu1  ;;  %v4812_v52 = vld [vmem:[#allocation5 + $0x1100] ss:$16 sps:$4 sm:$0xff]   ;;  %4106 = vmatprep.subr.bf16.mxu0 %v4811_v51 }
 0x38e   :  { %v2458_v60 = vadd.f32 %v2457_v58, %v2417_v56  ;;  %v2544_v61 = vmax.f32 %v2456_v57, 0.0  ;;  %v2499_v8 = vadd.f32 %v2498_v59, %v1735_v54  ;;  %v4813_v55 = vld [vmem:[#allocation5 + $0x11e0] ss:$16 sps:$4 sm:$0xff]   ;;  %v2622_v54 = vrot.slane %v2613_v4, %v4968_v11 }
 0x38f   :  { %v2459_v62 = vpop.f32.mrf.mxu0  ;;  %v2500_v0 = vpop.f32.mrf.mxu1  ;;  %v4814_v56 = vld [vmem:[#allocation5 + $0x10e0] ss:$16 sps:$4 sm:$0xff]  }
 0x390   :  { %v2545_v1 = vmax.f32 %v2458_v60, 0.0  ;;  %v2614_v63 = vpack.c.bf16 %v2544_v61, %v2544_v61  ;;  %v4815_v57 = vld [vmem:[#allocation5 + $0x11c0] ss:$16 sps:$4 sm:$0xff]  }
 0x391   :  { %v2460_v2 = vpop.f32.mrf.mxu0  ;;  %v2501_v3 = vpop.f32.mrf.mxu1  ;;  %v4816_v58 = vld [vmem:[#allocation5 + $0x10c0] ss:$16 sps:$4 sm:$0xff]  }
 0x392   :  { %v2615_v53 = vpack.c.bf16 %v2545_v1, %v2545_v1  ;;  %v4817_v59 = vld [vmem:[#allocation5 + $0x11a0] ss:$16 sps:$4 sm:$0xff]  }
 0x393   :  { %v4818_v60 = vld [vmem:[#allocation5 + $0x10a0] ss:$16 sps:$4 sm:$0xff]  }
 0x394   :  { %2981 = vmatprep.mubr.bf16.mxu1 %v2615_v53  ;;  %v4819_v61 = vld [vmem:[#allocation5 + $0x1180] ss:$16 sps:$4 sm:$0xff]  }
 0x395   :  { %2982 = vmatmul.mubr.bf16.vlgmr.msra.gmra.mxu1 %v2614_v63  ;;  %v4820_v62 = vld [vmem:[#allocation5 + $0x1080] ss:$16 sps:$4 sm:$0xff]  }
 0x396   :  { %3241 = vmatpush1.bf16.msra.mxu1 %v4763_v19  ;;  %v4821_v0 = vld [vmem:[#allocation5 + $0x1160] ss:$16 sps:$4 sm:$0xff]  }
 0x397   :  { %3242 = vmatprep.subr.bf16.mxu1 %v4768_v22  ;;  %v4822_v1 = vld [vmem:[#allocation5 + $0x1060] ss:$16 sps:$4 sm:$0xff]  }
 0x398   :  { %v4824_v22 = vld [vmem:[#allocation5 + $0x1040] ss:$16 sps:$4 sm:$0xff]  }
 0x39a   :  { %3243 = vmatpush1.bf16.msra.mxu1 %v4766_v27  ;;  %v4825_v27 = vld [vmem:[#allocation5 + $0x1120] ss:$16 sps:$4 sm:$0xff]  }
 0x39b   :  { %3244 = vmatprep.subr.bf16.mxu1 %v4771_v29  ;;  %v4826_v29 = vld [vmem:[#allocation5 + $0x1020] ss:$16 sps:$4 sm:$0xff]  }
 0x39e   :  { %3245 = vmatpush1.bf16.msra.mxu1 %v4769_v23  ;;  %v4933_v23 = vmov 0.0  }
 0x39f   :  { %3246 = vmatprep.subr.bf16.mxu1 %v4774_v24  ;;  %v3066_v24 = vld [vmem:[#allocation7 + $0x5] ss:$8 sm:$0x3] }
 0x3a2   :  { %3247 = vmatpush1.bf16.msra.mxu1 %v4772_v25  ;;  %v3073_v25 = vrot.slane %v3066_v24, %v4968_v11  ;;  %v4829_v11 = vld [vmem:[#allocation5 + $0x12c0] ss:$16 sps:$4 sm:$0xff]  }
 0x3a3   :  { %3248 = vmatprep.subr.bf16.mxu1 %v4777_v26  ;;  %v3077_v26 = vrot.slane %v3066_v24, %v4971_v12 }
 0x3a6   :  { %3249 = vmatpush1.bf16.msra.mxu1 %v4775_v28 }
 0x3a7   :  { %3250 = vmatprep.subr.bf16.mxu1 %v4780_v30 }
 0x3aa   :  { %3251 = vmatpush1.bf16.msra.mxu1 %v4778_v31 }
 0x3ab   :  { %3252 = vmatprep.subr.bf16.mxu1 %v4783_v32 }
 0x3ae   :  { %3253 = vmatpush1.bf16.msra.mxu1 %v4781_v33 }
 0x3af   :  { %3254 = vmatprep.subr.bf16.mxu1 %v4786_v34 }
 0x3b2   :  { %3255 = vmatpush1.bf16.msra.mxu1 %v4784_v35 }
 0x3b3   :  { %3256 = vmatprep.subr.bf16.mxu1 %v4789_v36 }
 0x3b6   :  { %3257 = vmatpush2.bf16.msra.mxu1 %v4787_v37 }
 0x3b7   :  { %3258 = vmatprep.subr.bf16.mxu1 %v4792_v38  ;;  %v4827_v38 = vld [vmem:[#allocation5 + $0x1300] ss:$16 sps:$4 sm:$0xff]  }
 0x3ba   :  { %3259 = vmatpush2.bf16.msra.mxu1 %v4790_v39 }
 0x3bb   :  { %3260 = vmatprep.subr.bf16.mxu1 %v4795_v40  ;;  %v4828_v40 = vld [vmem:[#allocation5 + $0x12e0] ss:$16 sps:$4 sm:$0xff]  }
 0x3be   :  { %3261 = vmatpush2.bf16.msra.mxu1 %v4793_v41  ;;  %v4831_v41 = vld [vmem:[#allocation5 + $0x1280] ss:$16 sps:$4 sm:$0xff]  }
 0x3bf   :  { %3262 = vmatprep.subr.bf16.mxu1 %v4798_v42  ;;  %v4832_v42 = vld [vmem:[#allocation5 + $0x1260] ss:$16 sps:$4 sm:$0xff]  }
 0x3c2   :  { %3263 = vmatpush2.bf16.msra.mxu1 %v4796_v43  ;;  %v4833_v43 = vld [vmem:[#allocation5 + $0x1240] ss:$16 sps:$4 sm:$0xff]  }
 0x3c3   :  { %3264 = vmatprep.subr.bf16.mxu1 %v4801_v10  ;;  %v4834_v10 = vld [vmem:[#allocation5 + $0x1220] ss:$16 sps:$4 sm:$0xff]  }
 0x3c6   :  { %3265 = vmatpush2.bf16.msra.mxu1 %v4799_v44  ;;  %v4835_v44 = vld [vmem:[#allocation5 + $0x1380] ss:$16 sps:$4 sm:$0xff]  }
 0x3c7   :  { %3266 = vmatprep.subr.bf16.mxu1 %v4804_v45  ;;  %v4836_v45 = vld [vmem:[#allocation5 + $0x1360] ss:$16 sps:$4 sm:$0xff]  }
 0x3ca   :  { %3267 = vmatpush2.bf16.msra.mxu1 %v4802_v46 }
 0x3cb   :  { %v2537_v7 = vpop.f32.mrf.mxu0  ;;  %3268 = vmatprep.subr.bf16.mxu1 %v4807_v47  ;;  %v3315_v47 = vld [vmem:[#allocation7 + $0x6] ss:$0 sm:$0xff] }
 0x3cc   :  { %v2538_v9 = vadd.f32 %v2537_v7, %v2497_v6  ;;  %v2626_v6 = vrot.slane %v2613_v4, %v4971_v12  ;;  %v4830_v12 = vld [vmem:[#allocation5 + $0x12a0] ss:$16 sps:$4 sm:$0xff]  }
 0x3cd   :  { %v2539_v13 = vpop.f32.mrf.mxu0 }
 0x3ce   :  { %v2540_v14 = vadd.f32 %v2539_v13, %v2499_v8  ;;  %v2546_v15 = vmax.f32 %v2538_v9, 0.0  ;;  %3269 = vmatpush2.bf16.msra.mxu1 %v4805_v48 }
 0x3cf   :  { %v2541_v16 = vpop.f32.mrf.mxu0  ;;  %3270 = vmatprep.subr.bf16.mxu1 %v4810_v49 }
 0x3d0   :  { %v2547_v17 = vmax.f32 %v2540_v14, 0.0  ;;  %v2616_v20 = vpack.c.bf16 %v2546_v15, %v2546_v15 }
 0x3d1   :  { %v2542_v5 = vpop.f32.mrf.mxu0 }
 0x3d2   :  { %v2617_v18 = vpack.c.bf16 %v2547_v17, %v2547_v17  ;;  %3271 = vmatpush2.bf16.msra.mxu1 %v4808_v50 }
 0x3d3   :  { %4162 = vmatprep.subr.bf16.mxu1 %v4933_v23 }
 0x3d4   :  { %3022 = vmatprep.mubr.bf16.mxu0 %v2617_v18 }
 0x3d5   :  { %3023 = vmatmul.mubr.bf16.vlgmr.msra.gmra.mxu0 %v2616_v20 }
 0x3d6   :  { %4107 = vmatpush3.bf16.msra.mxu0 %v4812_v52 }
 0x3d7   :  { %4108 = vmatprep.subr.bf16.mxu0 %v4813_v55 }
 0x3da   :  { %4109 = vmatpush3.bf16.msra.mxu0 %v4814_v56 }
 0x3db   :  { %4110 = vmatprep.subr.bf16.mxu0 %v4815_v57  ;;  %v4837_v57 = vld [vmem:[#allocation5 + $0x1340] ss:$16 sps:$4 sm:$0xff]  }
 0x3de   :  { %4111 = vmatpush3.bf16.msra.mxu0 %v4816_v58  ;;  %v4838_v58 = vld [vmem:[#allocation5 + $0x1320] ss:$16 sps:$4 sm:$0xff]  }
 0x3df   :  { %4112 = vmatprep.subr.bf16.mxu0 %v4817_v59  ;;  %v3471_v59 = vld [vmem:[#allocation7 + $0x7] ss:$0 sm:$0xff] }
 0x3e2   :  { %4113 = vmatpush3.bf16.msra.mxu0 %v4818_v60 }
 0x3e3   :  { %4114 = vmatprep.subr.bf16.mxu0 %v4819_v61 }
 0x3e6   :  { %4115 = vmatpush3.bf16.msra.mxu0 %v4820_v62 }
 0x3e7   :  { %4116 = vmatprep.subr.bf16.mxu0 %v4821_v0 }
 0x3ea   :  { %4117 = vmatpush3.bf16.msra.mxu0 %v4822_v1 }
 0x3eb   :  { %4118 = vmatprep.subr.bf16.mxu0 %v4823_v21 }
 0x3ee   :  { %4119 = vmatpush3.bf16.msra.mxu0 %v4824_v22 }
 0x3ef   :  { %4120 = vmatprep.subr.bf16.mxu0 %v4825_v27 }
 0x3f2   :  { %4121 = vmatpush3.bf16.msra.mxu0 %v4826_v29 }
 0x3f3   :  { %4142 = vmatprep.subr.bf16.mxu0 %v4933_v23 }
 0x455   :  { %v2983_v2 = vpop.f32.mrf.mxu1 }
 0x456   :  { %v2984_v7 = vadd.f32 %v2983_v2, %v2622_v54 }
 0x457   :  { %v2985_v3 = vpop.f32.mrf.mxu1 }
 0x458   :  { %v2986_v9 = vadd.f32 %v2985_v3, %v2626_v6 }
 0x459   :  { %v2987_v53 = vpop.f32.mrf.mxu1 }
 0x45a   :  { %v3570_v53 = vld [vmem:[#allocation7 + $0x20] ss:$0 sm:$0xff] }
 0x45b   :  { %v2988_v63 = vpop.f32.mrf.mxu1 }
 0x495   :  { %v3024_v8 = vpop.f32.mrf.mxu0 }
 0x496   :  { %v3025_v13 = vadd.f32 %v3024_v8, %v2984_v7 }
 0x497   :  { %v3026_v14 = vpop.f32.mrf.mxu0 }
 0x498   :  { %v3027_v15 = vadd.f32 %v3026_v14, %v2986_v9  ;;  %v3031_v16 = vmax.f32 %v3025_v13, 0.0 }
 0x499   :  { %v3028_v17 = vpop.f32.mrf.mxu0 }
 0x49a   :  { %v3032_v5 = vmax.f32 %v3027_v15, 0.0  ;;  %v3067_v19 = vpack.c.bf16 %v3031_v16, %v3031_v16 }
 0x49b   :  { %v3029_v18 = vpop.f32.mrf.mxu0 }
 0x49c   :  { %v3068_v20 = vpack.c.bf16 %v3032_v5, %v3032_v5 }
 0x49e   :  { %3272 = vmatprep.mubr.bf16.mxu1 %v3068_v20 }
 0x49f   :  { %3273 = vmatmul.mubr.bf16.vlgmr.msra.gmra.mxu1 %v3067_v19 }
 0x4a0   :  { %4170 = vmatprep.mubr.msk.bf16.mxu1 %vm4934_vm2, %v4933_v23  ;;  %4163 = vmatpush3.bf16.msra.mxu1 %v4835_v44 }
 0x4a1   :  { %4164 = vmatprep.subr.bf16.mxu1 %v4933_v23 }
 0x4a4   :  { %4165 = vmatpush3.bf16.msra.mxu1 %v4836_v45 }
 0x4a5   :  { %4166 = vmatprep.subr.bf16.mxu1 %v4933_v23 }
 0x4a8   :  { %4167 = vmatpush3.bf16.msra.mxu1 %v4837_v57 }
 0x4a9   :  { %4168 = vmatprep.subr.bf16.mxu1 %v4933_v23 }
 0x4ac   :  { %4169 = vmatpush3.bf16.msra.mxu1 %v4838_v58 }
 0x55f   :  { %v3274_v28 = vpop.f32.mrf.mxu1 }
 0x560   :  { %v3275_v30 = vadd.f32 %v3274_v28, %v3073_v25 }
 0x561   :  { %v3276_v31 = vpop.f32.mrf.mxu1 }
 0x562   :  { %v3277_v32 = vadd.f32 %v3276_v31, %v3077_v26  ;;  %v3281_v33 = vmax.f32 %v3275_v30, 0.0 }
 0x563   :  { %v3278_v34 = vpop.f32.mrf.mxu1 }
 0x564   :  { %v3282_v35 = vmax.f32 %v3277_v32, 0.0  ;;  %v3316_v39 = vpack.c.bf16 %v3281_v33, %v3281_v33 }
 0x565   :  { %v3279_v36 = vpop.f32.mrf.mxu1 }
 0x566   :  { %v3317_v37 = vpack.c.bf16 %v3282_v35, %v3282_v35 }
 0x568   :  { %3446 = vmatprep.mubr.bf16.mxu0 %v3317_v37 }
 0x569   :  { %3447 = vmatmul.mubr.bf16.vlgmr.msra.gmra.mxu0 %v3316_v39 }
 0x56a   :  { %4143 = vmatpush3.bf16.msra.mxu0 %v4827_v38  ;;  %4158 = vmatprep.mubr.msk.bf16.mxu0 %vm4934_vm2, %v4933_v23 }
 0x56b   :  { %4144 = vmatprep.subr.bf16.mxu0 %v4933_v23 }
 0x56e   :  { %4145 = vmatpush3.bf16.msra.mxu0 %v4828_v40 }
 0x56f   :  { %4146 = vmatprep.subr.bf16.mxu0 %v4933_v23 }
 0x572   :  { %4147 = vmatpush3.bf16.msra.mxu0 %v4829_v11 }
 0x573   :  { %4148 = vmatprep.subr.bf16.mxu0 %v4933_v23 }
 0x576   :  { %4149 = vmatpush3.bf16.msra.mxu0 %v4830_v12 }
 0x577   :  { %4150 = vmatprep.subr.bf16.mxu0 %v4933_v23 }
 0x57a   :  { %4151 = vmatpush3.bf16.msra.mxu0 %v4831_v41 }
 0x57b   :  { %4152 = vmatprep.subr.bf16.mxu0 %v4933_v23 }
 0x57e   :  { %4153 = vmatpush3.bf16.msra.mxu0 %v4832_v42 }
 0x57f   :  { %4154 = vmatprep.subr.bf16.mxu0 %v4933_v23 }
 0x582   :  { %4155 = vmatpush3.bf16.msra.mxu0 %v4833_v43 }
 0x583   :  { %4156 = vmatprep.subr.bf16.mxu0 %v4933_v23 }
 0x586   :  { %4157 = vmatpush3.bf16.msra.mxu0 %v4834_v10 }
 0x629   :  { %v4122_v46 = vpop.f32.mrf.mxu0 }
 0x62b   :  { %v4123_v48 = vpop.f32.mrf.mxu0 }
 0x62c   :  { %v4124_v49 = vadd.f32 %v4123_v48, %v4122_v46 }
 0x62d   :  { %v4125_v50 = vpop.f32.mrf.mxu0 }
 0x62e   :  { %v3449_v51 = vadd.f32 %v4124_v49, %v3315_v47 }
 0x62f   :  { %v4126_v52 = vpop.f32.mrf.mxu0 }
 0x630   :  { %v3454_v55 = vmax.f32 %v3449_v51, 0.0 }
 0x632   :  { %v3472_v56 = vpack.c.bf16 %v3454_v55, %v3454_v55 }
 0x634   :  { %4159 = vmatmul.mubr.bf16.vlgmr.msra.gmra.mxu0 %v3472_v56 }
 0x6f4   :  { %v3555_v60 = vpop.f32.mrf.mxu0 }
 0x6f5   :  { %v3556_v61 = vadd.f32 %v3555_v60, %v3471_v59 }
 0x6f6   :  { %v4160_v62 = vpop.f32.mrf.mxu0 }
 0x6f7   :  { %v3561_v0 = vmax.f32 %v3556_v61, 0.0 }
 0x6f8   :  { %v3558_v1 = vpop.f32.mrf.mxu0 }
 0x6f9   :  { %v3571_v2 = vpack.c.bf16 %v3561_v0, %v3561_v0 }
 0x6fa   :  { %v4161_v3 = vpop.f32.mrf.mxu0 }
 0x6fb   :  { %4171 = vmatmul.mubr.msk.bf16.vlgmr.msra.gmra.mxu1 %vm3596_vm3, %v3571_v2 }
 0x7bb   :  { %v3634_v63 = vpop.f32.mrf.mxu1 }
 0x7bc   :  { %v3635_v4 = vadd.f32 %v3634_v63, %v3570_v53 }
 0x7bd   :  { %v4172_v54 = vpop.f32.mrf.mxu1 }
 0x7be   :  { %3640 = vst [vmem:[#allocation8] sm:$0xff] %v3635_v4 }
 0x7bf   :  { %v3637_v6 = vpop.f32.mrf.mxu1 }
 0x7c0   :  { %4910 = shalt.err (!%p4907_p5)
}
 0x7c1   :  { %3650 = dma.vmem_to_hbm [thread:$0]  %s3648_s2, 128, %s5025_s3, [#allocation4]   ;;  %v4173_v7 = vpop.f32.mrf.mxu1 }
 0x7c2   :  { %4923 = dma.done.wait [#allocation4], 128  }
 0x7c3   :  { %4924 = vsyncadd [#allocation4], 4294967168 }
 0x7c4   :  { %3654 = vsyncpa [#allocation3], 1 }
 0x7c5   :  { %3655 = vsyncpa [#allocation6], 1 }
 0x7c6   :  { %3656 = vsyncpa [#allocation4], 1 }

</bundles_post_ra>
